<compile_context>
chip_gen: v5e
topology: v5e:2x2
jax: 0.10.0
libtpu: 0.0.40
codegen_flags: <defaults>
</compile_context>

<pallas_src>
import functools

import numpy as np
import jax
import jax.numpy as jnp
from jax import lax
from jax.experimental import pallas as pl
from jax.experimental.pallas import tpu as pltpu

LANE = 128


# ----------------------------------------------------------------------------- host-side helpers

def _lane_pad(n):
    return ((n + LANE - 1) // LANE) * LANE


def _pad_index(r, c, w):
    """Real pixel (r, c) of an (h, w) grid -> index in the zero-bordered flat layout."""
    return (r + 1) * (w + 2) + (c + 1)


def _bilinear_matrix(n_in, n_out):
    """1-D bilinear interpolation matrix with align_corners=True (UpsamplingBilinear2d)."""
    a = np.zeros((n_out, n_in), np.float32)
    if n_in == 1:
        a[:, 0] = 1.0
        return a
    for o in range(n_out):
        src = o * (n_in - 1) / (n_out - 1)
        i0 = int(np.floor(src))
        frac = src - i0
        i1 = min(i0 + 1, n_in - 1)
        a[o, i0] += 1.0 - frac
        a[o, i1] += frac
    return a


def _pool_matrix(h, w):
    """Selection matrix: padded-flat (h,w) domain -> padded-flat (h/2,w/2) domain.

    Column for pooled pixel (ro,co) picks the window-anchor position (2ro,2co); all border
    and lane-padding columns are zero, so the output has a clean zero border."""
    hh, wh = h // 2, w // 2
    pin, pout = _lane_pad((h + 2) * (w + 2)), _lane_pad((hh + 2) * (wh + 2))
    s = np.zeros((pin, pout), np.float32)
    for ro in range(hh):
        for co in range(wh):
            s[_pad_index(2 * ro, 2 * co, w), _pad_index(ro, co, wh)] = 1.0
    return jnp.asarray(s)


def _upsample_matrix(h, w):
    """Bilinear x2 (align_corners=True) matrix on padded-flat domains: (h,w) -> (2h,2w)."""
    ho, wo = 2 * h, 2 * w
    m = np.kron(_bilinear_matrix(h, ho), _bilinear_matrix(w, wo))  # (ho*wo, h*w)
    pin, pout = _lane_pad((h + 2) * (w + 2)), _lane_pad((ho + 2) * (wo + 2))
    u = np.zeros((pin, pout), np.float32)
    iidx = np.array([_pad_index(r, c, w) for r in range(h) for c in range(w)])
    oidx = np.array([_pad_index(r, c, wo) for r in range(ho) for c in range(wo)])
    u[np.ix_(iidx, oidx)] = m.T
    return jnp.asarray(u)


# ----------------------------------------------------------------------------- fused kernel

def _rot(x, k, width):
    """out[:, q] = x[:, (q + k) % width] for a static shift k (cheap VMEM rotation)."""
    k = k % width
    if k == 0:
        return x
    return jnp.concatenate([x[:, k:], x[:, :k]], axis=1)


def _conv3x3(x, wm, bm, w_real, width, act):
    """3x3 SAME conv on the padded-flat layout.

    x: (Cin, width) with a zero border around the real (H, w_real) grid.
    wm: (Cout, 9*Cin) with taps ordered (kh, kw, ci).  bm: (Cout, 1).
    Interior output positions are exact; border/lane-padding positions carry garbage that the
    next selection/upsample matrix (or the final wrapper slice) discards."""
    taps = []
    for kh in range(3):
        for kw in range(3):
            taps.append(_rot(x, (kh - 1) * (w_real + 2) + (kw - 1), width))
    t = jnp.concatenate(taps, axis=0)                               # (9*Cin, width)
    y = jnp.dot(wm, t, preferred_element_type=jnp.float32) + bm     # single MXU matmul
    if act == "relu":
        return jnp.maximum(y, 0.0)
    return jnp.tanh(y)


def _maxpool2(x, w_real, width, sel):
    """2x2/stride-2 max pool: max of 4 shifted views, then compact via selection matmul."""
    m = jnp.maximum(jnp.maximum(x, _rot(x, 1, width)),
                    jnp.maximum(_rot(x, w_real + 2, width), _rot(x, w_real + 3, width)))
    return jnp.dot(m, sel, preferred_element_type=jnp.float32)


def _autoencoder_kernel(x_ref, wm1, bv1, wm2, bv2, wm3, bv3, wm4, bv4, wm5, bv5,
                        s1_ref, s2_ref, u1_ref, u2_ref, o_ref, *, dims):
    (w0, l0), (w1, l1), (w2, l2) = dims   # (real width, lane-padded flat size) per level
    x = x_ref[0]                                                        # (1, l0)
    # encoder
    a = _conv3x3(x, wm1[...], bv1[...], w0, l0, "relu")                 # (16, l0)
    a = _maxpool2(a, w0, l0, s1_ref[...])                               # (16, l1)
    a = _conv3x3(a, wm2[...], bv2[...], w1, l1, "relu")                 # (8,  l1)
    a = _maxpool2(a, w1, l1, s2_ref[...])                               # (8,  l2)
    # decoder
    a = _conv3x3(a, wm3[...], bv3[...], w2, l2, "relu")                 # (8,  l2)
    a = jnp.dot(a, u1_ref[...], preferred_element_type=jnp.float32)     # (8,  l1)
    a = _conv3x3(a, wm4[...], bv4[...], w1, l1, "relu")                 # (16, l1)
    a = jnp.dot(a, u2_ref[...], preferred_element_type=jnp.float32)     # (16, l0)
    a = _conv3x3(a, wm5[...], bv5[...], w0, l0, "tanh")                 # (1,  l0)
    o_ref[0] = a


# ----------------------------------------------------------------------------- wrapper / model

def init_params(key):
    """Deterministic init; same tensor shapes as the PyTorch module (weights stored HWIO)."""
    layer_io = [(1, 16), (16, 8), (8, 8), (8, 16), (16, 1)]
    keys = jax.random.split(key, len(layer_io))
    params = {}
    for idx, (k, (cin, cout)) in enumerate(zip(keys, layer_io), start=1):
        kw, kb = jax.random.split(k)
        bound = 1.0 / np.sqrt(cin * 9)  # PyTorch-style fan_in bound
        params[f"w{idx}"] = jax.random.uniform(kw, (3, 3, cin, cout), jnp.float32, -bound, bound)
        params[f"b{idx}"] = jax.random.uniform(kb, (cout,), jnp.float32, -bound, bound)
    return params


def forward(x_nchw, params):
    """Fused Pallas forward pass.  x_nchw: (N, 1, H, W) float32 -> (N, 1, H, W)."""
    n, cin, h0, w0 = x_nchw.shape
    assert cin == 1 and h0 % 4 == 0 and w0 % 4 == 0
    h1, w1 = h0 // 2, w0 // 2
    h2, w2 = h1 // 2, w1 // 2
    p0 = (h0 + 2) * (w0 + 2)
    l0, l1, l2 = _lane_pad(p0), _lane_pad((h1 + 2) * (w1 + 2)), _lane_pad((h2 + 2) * (w2 + 2))

    # zero-bordered, flattened, lane-padded input: (N, 1, l0)  (only layout plumbing in XLA)
    xp = jnp.pad(x_nchw, ((0, 0), (0, 0), (1, 1), (1, 1))).reshape(n, 1, p0)
    xp = jnp.pad(xp, ((0, 0), (0, 0), (0, l0 - p0)))

    def wmat(w):   # HWIO (3,3,Cin,Cout) -> (Cout, 9*Cin), columns ordered (kh, kw, ci)
        return jnp.transpose(w, (3, 0, 1, 2)).reshape(w.shape[-1], -1)

    def bvec(b):
        return b.reshape(-1, 1)

    consts = []
    for i in range(1, 6):
        consts += [wmat(params[f"w{i}"]), bvec(params[f"b{i}"])]
    consts += [_pool_matrix(h0, w0), _pool_matrix(h1, w1),
               _upsample_matrix(h2, w2), _upsample_matrix(h1, w1)]

    def const_spec(a):
        zeros = (0,) * a.ndim
        return pl.BlockSpec(a.shape, lambda i, _z=zeros: _z)

    kernel = functools.partial(
        _autoencoder_kernel, dims=((w0, l0), (w1, l1), (w2, l2)))

    out = pl.pallas_call(
        kernel,
        out_shape=jax.ShapeDtypeStruct((n, 1, l0), jnp.float32),
        grid=(n,),
        in_specs=[pl.BlockSpec((1, 1, l0), lambda i: (i, 0, 0))]
                 + [const_spec(a) for a in consts],
        out_specs=pl.BlockSpec((1, 1, l0), lambda i: (i, 0, 0)),
        compiler_params=pltpu.CompilerParams(dimension_semantics=("parallel",)),
    )(xp, *consts)

    # extract the real interior from the padded-flat output (layout plumbing)
    y = out[:, :, :p0].reshape(n, 1, h0 + 2, w0 + 2)[:, :, 1:h0 + 1, 1:w0 + 1]
    return y


# ----------------------------------------------------------------------------- pure-JAX reference

def _ref_conv(x, w, b, act):
    y = lax.conv_general_dilated(
        x, w, window_strides=(1, 1), padding="SAME",
        dimension_numbers=("NHWC", "HWIO", "NHWC"),
        precision=lax.Precision.HIGHEST,
    ) + b
    if act == "relu":
        return jnp.maximum(y, 0.0)
    if act == "tanh":
        return jnp.tanh(y)
    return y


def _ref_maxpool(x):
    return lax.reduce_window(x, -jnp.inf, lax.max, (1, 2, 2, 1), (1, 2, 2, 1), "VALID")


def _upsample_matrix_dense(h, w):
    return jnp.asarray(np.kron(_bilinear_matrix(h, 2 * h), _bilinear_matrix(w, 2 * w)),
                       jnp.float32)


def _ref_upsample(x):
    n, h, wd, c = x.shape
    m = _upsample_matrix_dense(h, wd)
    y = jnp.einsum("os,nsc->noc", m, x.reshape(n, h * wd, c))
    return y.reshape(n, 2 * h, 2 * wd, c)


def forward_reference(x_nchw, params):
    x = jnp.transpose(x_nchw, (0, 2, 3, 1))
    x = _ref_conv(x, params["w1"], params["b1"], "relu")
    x = _ref_maxpool(x)
    x = _ref_conv(x, params["w2"], params["b2"], "relu")
    x = _ref_maxpool(x)
    x = _ref_conv(x, params["w3"], params["b3"], "relu")
    x = _ref_upsample(x)
    x = _ref_conv(x, params["w4"], params["b4"], "relu")
    x = _ref_upsample(x)
    x = _ref_conv(x, params["w5"], params["b5"], "tanh")
    return jnp.transpose(x, (0, 3, 1, 2))


# ----------------------------------------------------------------------------- main

if __name__ == "__main__":
    key = jax.random.PRNGKey(0)
    pkey, xkey = jax.random.split(key)
    params = init_params(pkey)

    # Input consistent with Conv2d(1, ...): (batch=2, channels=1, 16, 16), NCHW.
    x = jax.random.normal(xkey, (2, 1, 16, 16), dtype=jnp.float32)

    fwd = jax.jit(forward)
    out = jax.block_until_ready(fwd(x, params))
    assert out.shape == (2, 1, 16, 16) and out.dtype == jnp.float32

    ref = jax.block_until_ready(forward_reference(x, params))
    np.testing.assert_allclose(np.asarray(out), np.asarray(ref), rtol=1e-2, atol=1e-2)

    print("KERNEL_OK")
</pallas_src>

<mosaic_0001>
module attributes {stable_mosaic.version = 11 : i64} {
  func.func @_autoencoder_kernel(%arg0: i32, %arg1: memref<1x1x384xf32, #tpu.memory_space<vmem>>, %arg2: memref<16x9xf32, #tpu.memory_space<vmem>>, %arg3: memref<16x1xf32, #tpu.memory_space<vmem>>, %arg4: memref<8x144xf32, #tpu.memory_space<vmem>>, %arg5: memref<8x1xf32, #tpu.memory_space<vmem>>, %arg6: memref<8x72xf32, #tpu.memory_space<vmem>>, %arg7: memref<8x1xf32, #tpu.memory_space<vmem>>, %arg8: memref<16x72xf32, #tpu.memory_space<vmem>>, %arg9: memref<16x1xf32, #tpu.memory_space<vmem>>, %arg10: memref<1x144xf32, #tpu.memory_space<vmem>>, %arg11: memref<1x1xf32, #tpu.memory_space<vmem>>, %arg12: memref<384x128xf32, #tpu.memory_space<vmem>>, %arg13: memref<128x128xf32, #tpu.memory_space<vmem>>, %arg14: memref<128x128xf32, #tpu.memory_space<vmem>>, %arg15: memref<128x384xf32, #tpu.memory_space<vmem>>, %arg16: memref<1x1x384xf32, #tpu.memory_space<vmem>>) attributes {dimension_semantics = [#tpu.dimension_semantics<parallel>], iteration_bounds = array<i64: 2>, scalar_prefetch = 0 : i64, scratch_operands = 0 : i64, tpu.core_type = #tpu.core_type<tc>, window_params = [{transform_indices = @transform_0, window_bounds = array<i64: 1, 1, 384>}, {pipeline_mode = #tpu.pipeline_mode<synchronous>, transform_indices = @transform_1, window_bounds = array<i64: 16, 9>}, {pipeline_mode = #tpu.pipeline_mode<synchronous>, transform_indices = @transform_2, window_bounds = array<i64: 16, 1>}, {pipeline_mode = #tpu.pipeline_mode<synchronous>, transform_indices = @transform_3, window_bounds = array<i64: 8, 144>}, {pipeline_mode = #tpu.pipeline_mode<synchronous>, transform_indices = @transform_4, window_bounds = array<i64: 8, 1>}, {pipeline_mode = #tpu.pipeline_mode<synchronous>, transform_indices = @transform_5, window_bounds = array<i64: 8, 72>}, {pipeline_mode = #tpu.pipeline_mode<synchronous>, transform_indices = @transform_6, window_bounds = array<i64: 8, 1>}, {pipeline_mode = #tpu.pipeline_mode<synchronous>, transform_indices = @transform_7, window_bounds = array<i64: 16, 72>}, {pipeline_mode = #tpu.pipeline_mode<synchronous>, transform_indices = @transform_8, window_bounds = array<i64: 16, 1>}, {pipeline_mode = #tpu.pipeline_mode<synchronous>, transform_indices = @transform_9, window_bounds = array<i64: 1, 144>}, {pipeline_mode = #tpu.pipeline_mode<synchronous>, transform_indices = @transform_10, window_bounds = array<i64: 1, 1>}, {pipeline_mode = #tpu.pipeline_mode<synchronous>, transform_indices = @transform_11, window_bounds = array<i64: 384, 128>}, {pipeline_mode = #tpu.pipeline_mode<synchronous>, transform_indices = @transform_12, window_bounds = array<i64: 128, 128>}, {pipeline_mode = #tpu.pipeline_mode<synchronous>, transform_indices = @transform_13, window_bounds = array<i64: 128, 128>}, {pipeline_mode = #tpu.pipeline_mode<synchronous>, transform_indices = @transform_14, window_bounds = array<i64: 128, 384>}, {transform_indices = @transform_15, window_bounds = array<i64: 1, 1, 384>}]} {
    %c0 = arith.constant 0 : index
    %c0_0 = arith.constant 0 : index
    %c0_1 = arith.constant 0 : index
    %0 = vector.load %arg1[%c0, %c0_0, %c0_1] : memref<1x1x384xf32, #tpu.memory_space<vmem>>, vector<1x1x384xf32>
    %1 = vector.shape_cast %0 : vector<1x1x384xf32> to vector<1x384xf32>
    %c0_2 = arith.constant 0 : index
    %c0_3 = arith.constant 0 : index
    %2 = vector.load %arg2[%c0_2, %c0_3] : memref<16x9xf32, #tpu.memory_space<vmem>>, vector<16x9xf32>
    %c0_4 = arith.constant 0 : index
    %c0_5 = arith.constant 0 : index
    %3 = vector.load %arg3[%c0_4, %c0_5] : memref<16x1xf32, #tpu.memory_space<vmem>>, vector<16x1xf32>
    %4 = vector.extract_strided_slice %1 {offsets = [0, 365], sizes = [1, 19], strides = [1, 1]} : vector<1x384xf32> to vector<1x19xf32>
    %5 = vector.extract_strided_slice %1 {offsets = [0, 0], sizes = [1, 365], strides = [1, 1]} : vector<1x384xf32> to vector<1x365xf32>
    %6 = tpu.concatenate %4, %5 in 1 : vector<1x19xf32>, vector<1x365xf32> -> vector<1x384xf32>
    %7 = vector.extract_strided_slice %1 {offsets = [0, 366], sizes = [1, 18], strides = [1, 1]} : vector<1x384xf32> to vector<1x18xf32>
    %8 = vector.extract_strided_slice %1 {offsets = [0, 0], sizes = [1, 366], strides = [1, 1]} : vector<1x384xf32> to vector<1x366xf32>
    %9 = tpu.concatenate %7, %8 in 1 : vector<1x18xf32>, vector<1x366xf32> -> vector<1x384xf32>
    %10 = vector.extract_strided_slice %1 {offsets = [0, 367], sizes = [1, 17], strides = [1, 1]} : vector<1x384xf32> to vector<1x17xf32>
    %11 = vector.extract_strided_slice %1 {offsets = [0, 0], sizes = [1, 367], strides = [1, 1]} : vector<1x384xf32> to vector<1x367xf32>
    %12 = tpu.concatenate %10, %11 in 1 : vector<1x17xf32>, vector<1x367xf32> -> vector<1x384xf32>
    %13 = vector.extract_strided_slice %1 {offsets = [0, 383], sizes = [1, 1], strides = [1, 1]} : vector<1x384xf32> to vector<1x1xf32>
    %14 = vector.extract_strided_slice %1 {offsets = [0, 0], sizes = [1, 383], strides = [1, 1]} : vector<1x384xf32> to vector<1x383xf32>
    %15 = tpu.concatenate %13, %14 in 1 : vector<1x1xf32>, vector<1x383xf32> -> vector<1x384xf32>
    %16 = vector.extract_strided_slice %1 {offsets = [0, 1], sizes = [1, 383], strides = [1, 1]} : vector<1x384xf32> to vector<1x383xf32>
    %17 = vector.extract_strided_slice %1 {offsets = [0, 0], sizes = [1, 1], strides = [1, 1]} : vector<1x384xf32> to vector<1x1xf32>
    %18 = tpu.concatenate %16, %17 in 1 : vector<1x383xf32>, vector<1x1xf32> -> vector<1x384xf32>
    %19 = vector.extract_strided_slice %1 {offsets = [0, 17], sizes = [1, 367], strides = [1, 1]} : vector<1x384xf32> to vector<1x367xf32>
    %20 = vector.extract_strided_slice %1 {offsets = [0, 0], sizes = [1, 17], strides = [1, 1]} : vector<1x384xf32> to vector<1x17xf32>
    %21 = tpu.concatenate %19, %20 in 1 : vector<1x367xf32>, vector<1x17xf32> -> vector<1x384xf32>
    %22 = vector.extract_strided_slice %1 {offsets = [0, 18], sizes = [1, 366], strides = [1, 1]} : vector<1x384xf32> to vector<1x366xf32>
    %23 = vector.extract_strided_slice %1 {offsets = [0, 0], sizes = [1, 18], strides = [1, 1]} : vector<1x384xf32> to vector<1x18xf32>
    %24 = tpu.concatenate %22, %23 in 1 : vector<1x366xf32>, vector<1x18xf32> -> vector<1x384xf32>
    %25 = vector.extract_strided_slice %1 {offsets = [0, 19], sizes = [1, 365], strides = [1, 1]} : vector<1x384xf32> to vector<1x365xf32>
    %26 = vector.extract_strided_slice %1 {offsets = [0, 0], sizes = [1, 19], strides = [1, 1]} : vector<1x384xf32> to vector<1x19xf32>
    %27 = tpu.concatenate %25, %26 in 1 : vector<1x365xf32>, vector<1x19xf32> -> vector<1x384xf32>
    %28 = tpu.concatenate %6, %9, %12, %15, %1, %18, %21, %24, %27 in 0 : vector<1x384xf32>, vector<1x384xf32>, vector<1x384xf32>, vector<1x384xf32>, vector<1x384xf32>, vector<1x384xf32>, vector<1x384xf32>, vector<1x384xf32>, vector<1x384xf32> -> vector<9x384xf32>
    %cst = arith.constant dense<0.000000e+00> : vector<16x384xf32>
    %29 = tpu.matmul %2, %28, %cst {dimension_numbers = #tpu.dot_dimension_numbers<[1], [0], [0], [1], [0, 0, 1, 1], [], []>} : vector<16x9xf32>, vector<9x384xf32>, vector<16x384xf32> -> vector<16x384xf32>
    %30 = vector.broadcast %3 : vector<16x1xf32> to vector<16x384xf32>
    %31 = arith.addf %29, %30 : vector<16x384xf32>
    %cst_6 = arith.constant 0.000000e+00 : f32
    %32 = vector.broadcast %cst_6 : f32 to vector<16x384xf32>
    %33 = arith.maximumf %31, %32 : vector<16x384xf32>
    %c0_7 = arith.constant 0 : index
    %c0_8 = arith.constant 0 : index
    %34 = vector.load %arg12[%c0_7, %c0_8] : memref<384x128xf32, #tpu.memory_space<vmem>>, vector<384x128xf32>
    %35 = vector.extract_strided_slice %33 {offsets = [0, 1], sizes = [16, 383], strides = [1, 1]} : vector<16x384xf32> to vector<16x383xf32>
    %36 = vector.extract_strided_slice %33 {offsets = [0, 0], sizes = [16, 1], strides = [1, 1]} : vector<16x384xf32> to vector<16x1xf32>
    %37 = tpu.concatenate %35, %36 in 1 : vector<16x383xf32>, vector<16x1xf32> -> vector<16x384xf32>
    %38 = arith.maximumf %33, %37 : vector<16x384xf32>
    %39 = vector.extract_strided_slice %33 {offsets = [0, 18], sizes = [16, 366], strides = [1, 1]} : vector<16x384xf32> to vector<16x366xf32>
    %40 = vector.extract_strided_slice %33 {offsets = [0, 0], sizes = [16, 18], strides = [1, 1]} : vector<16x384xf32> to vector<16x18xf32>
    %41 = tpu.concatenate %39, %40 in 1 : vector<16x366xf32>, vector<16x18xf32> -> vector<16x384xf32>
    %42 = vector.extract_strided_slice %33 {offsets = [0, 19], sizes = [16, 365], strides = [1, 1]} : vector<16x384xf32> to vector<16x365xf32>
    %43 = vector.extract_strided_slice %33 {offsets = [0, 0], sizes = [16, 19], strides = [1, 1]} : vector<16x384xf32> to vector<16x19xf32>
    %44 = tpu.concatenate %42, %43 in 1 : vector<16x365xf32>, vector<16x19xf32> -> vector<16x384xf32>
    %45 = arith.maximumf %41, %44 : vector<16x384xf32>
    %46 = arith.maximumf %38, %45 : vector<16x384xf32>
    %cst_9 = arith.constant dense<0.000000e+00> : vector<16x128xf32>
    %47 = tpu.matmul %46, %34, %cst_9 {dimension_numbers = #tpu.dot_dimension_numbers<[1], [0], [0], [1], [0, 0, 1, 1], [], []>} : vector<16x384xf32>, vector<384x128xf32>, vector<16x128xf32> -> vector<16x128xf32>
    %c0_10 = arith.constant 0 : index
    %c0_11 = arith.constant 0 : index
    %48 = vector.load %arg4[%c0_10, %c0_11] : memref<8x144xf32, #tpu.memory_space<vmem>>, vector<8x144xf32>
    %c0_12 = arith.constant 0 : index
    %c0_13 = arith.constant 0 : index
    %49 = vector.load %arg5[%c0_12, %c0_13] : memref<8x1xf32, #tpu.memory_space<vmem>>, vector<8x1xf32>
    %50 = vector.extract_strided_slice %47 {offsets = [0, 117], sizes = [16, 11], strides = [1, 1]} : vector<16x128xf32> to vector<16x11xf32>
    %51 = vector.extract_strided_slice %47 {offsets = [0, 0], sizes = [16, 117], strides = [1, 1]} : vector<16x128xf32> to vector<16x117xf32>
    %52 = tpu.concatenate %50, %51 in 1 : vector<16x11xf32>, vector<16x117xf32> -> vector<16x128xf32>
    %53 = vector.extract_strided_slice %47 {offsets = [0, 118], sizes = [16, 10], strides = [1, 1]} : vector<16x128xf32> to vector<16x10xf32>
    %54 = vector.extract_strided_slice %47 {offsets = [0, 0], sizes = [16, 118], strides = [1, 1]} : vector<16x128xf32> to vector<16x118xf32>
    %55 = tpu.concatenate %53, %54 in 1 : vector<16x10xf32>, vector<16x118xf32> -> vector<16x128xf32>
    %56 = vector.extract_strided_slice %47 {offsets = [0, 119], sizes = [16, 9], strides = [1, 1]} : vector<16x128xf32> to vector<16x9xf32>
    %57 = vector.extract_strided_slice %47 {offsets = [0, 0], sizes = [16, 119], strides = [1, 1]} : vector<16x128xf32> to vector<16x119xf32>
    %58 = tpu.concatenate %56, %57 in 1 : vector<16x9xf32>, vector<16x119xf32> -> vector<16x128xf32>
    %59 = vector.extract_strided_slice %47 {offsets = [0, 127], sizes = [16, 1], strides = [1, 1]} : vector<16x128xf32> to vector<16x1xf32>
    %60 = vector.extract_strided_slice %47 {offsets = [0, 0], sizes = [16, 127], strides = [1, 1]} : vector<16x128xf32> to vector<16x127xf32>
    %61 = tpu.concatenate %59, %60 in 1 : vector<16x1xf32>, vector<16x127xf32> -> vector<16x128xf32>
    %62 = vector.extract_strided_slice %47 {offsets = [0, 1], sizes = [16, 127], strides = [1, 1]} : vector<16x128xf32> to vector<16x127xf32>
    %63 = vector.extract_strided_slice %47 {offsets = [0, 0], sizes = [16, 1], strides = [1, 1]} : vector<16x128xf32> to vector<16x1xf32>
    %64 = tpu.concatenate %62, %63 in 1 : vector<16x127xf32>, vector<16x1xf32> -> vector<16x128xf32>
    %65 = vector.extract_strided_slice %47 {offsets = [0, 9], sizes = [16, 119], strides = [1, 1]} : vector<16x128xf32> to vector<16x119xf32>
    %66 = vector.extract_strided_slice %47 {offsets = [0, 0], sizes = [16, 9], strides = [1, 1]} : vector<16x128xf32> to vector<16x9xf32>
    %67 = tpu.concatenate %65, %66 in 1 : vector<16x119xf32>, vector<16x9xf32> -> vector<16x128xf32>
    %68 = vector.extract_strided_slice %47 {offsets = [0, 10], sizes = [16, 118], strides = [1, 1]} : vector<16x128xf32> to vector<16x118xf32>
    %69 = vector.extract_strided_slice %47 {offsets = [0, 0], sizes = [16, 10], strides = [1, 1]} : vector<16x128xf32> to vector<16x10xf32>
    %70 = tpu.concatenate %68, %69 in 1 : vector<16x118xf32>, vector<16x10xf32> -> vector<16x128xf32>
    %71 = vector.extract_strided_slice %47 {offsets = [0, 11], sizes = [16, 117], strides = [1, 1]} : vector<16x128xf32> to vector<16x117xf32>
    %72 = vector.extract_strided_slice %47 {offsets = [0, 0], sizes = [16, 11], strides = [1, 1]} : vector<16x128xf32> to vector<16x11xf32>
    %73 = tpu.concatenate %71, %72 in 1 : vector<16x117xf32>, vector<16x11xf32> -> vector<16x128xf32>
    %74 = tpu.concatenate %52, %55, %58, %61, %47, %64, %67, %70, %73 in 0 : vector<16x128xf32>, vector<16x128xf32>, vector<16x128xf32>, vector<16x128xf32>, vector<16x128xf32>, vector<16x128xf32>, vector<16x128xf32>, vector<16x128xf32>, vector<16x128xf32> -> vector<144x128xf32>
    %cst_14 = arith.constant dense<0.000000e+00> : vector<8x128xf32>
    %75 = tpu.matmul %48, %74, %cst_14 {dimension_numbers = #tpu.dot_dimension_numbers<[1], [0], [0], [1], [0, 0, 1, 1], [], []>} : vector<8x144xf32>, vector<144x128xf32>, vector<8x128xf32> -> vector<8x128xf32>
    %76 = vector.broadcast %49 : vector<8x1xf32> to vector<8x128xf32>
    %77 = arith.addf %75, %76 : vector<8x128xf32>
    %cst_15 = arith.constant 0.000000e+00 : f32
    %78 = vector.broadcast %cst_15 : f32 to vector<8x128xf32>
    %79 = arith.maximumf %77, %78 : vector<8x128xf32>
    %c0_16 = arith.constant 0 : index
    %c0_17 = arith.constant 0 : index
    %80 = vector.load %arg13[%c0_16, %c0_17] : memref<128x128xf32, #tpu.memory_space<vmem>>, vector<128x128xf32>
    %81 = vector.extract_strided_slice %79 {offsets = [0, 1], sizes = [8, 127], strides = [1, 1]} : vector<8x128xf32> to vector<8x127xf32>
    %82 = vector.extract_strided_slice %79 {offsets = [0, 0], sizes = [8, 1], strides = [1, 1]} : vector<8x128xf32> to vector<8x1xf32>
    %83 = tpu.concatenate %81, %82 in 1 : vector<8x127xf32>, vector<8x1xf32> -> vector<8x128xf32>
    %84 = arith.maximumf %79, %83 : vector<8x128xf32>
    %85 = vector.extract_strided_slice %79 {offsets = [0, 10], sizes = [8, 118], strides = [1, 1]} : vector<8x128xf32> to vector<8x118xf32>
    %86 = vector.extract_strided_slice %79 {offsets = [0, 0], sizes = [8, 10], strides = [1, 1]} : vector<8x128xf32> to vector<8x10xf32>
    %87 = tpu.concatenate %85, %86 in 1 : vector<8x118xf32>, vector<8x10xf32> -> vector<8x128xf32>
    %88 = vector.extract_strided_slice %79 {offsets = [0, 11], sizes = [8, 117], strides = [1, 1]} : vector<8x128xf32> to vector<8x117xf32>
    %89 = vector.extract_strided_slice %79 {offsets = [0, 0], sizes = [8, 11], strides = [1, 1]} : vector<8x128xf32> to vector<8x11xf32>
    %90 = tpu.concatenate %88, %89 in 1 : vector<8x117xf32>, vector<8x11xf32> -> vector<8x128xf32>
    %91 = arith.maximumf %87, %90 : vector<8x128xf32>
    %92 = arith.maximumf %84, %91 : vector<8x128xf32>
    %cst_18 = arith.constant dense<0.000000e+00> : vector<8x128xf32>
    %93 = tpu.matmul %92, %80, %cst_18 {dimension_numbers = #tpu.dot_dimension_numbers<[1], [0], [0], [1], [0, 0, 1, 1], [], []>} : vector<8x128xf32>, vector<128x128xf32>, vector<8x128xf32> -> vector<8x128xf32>
    %c0_19 = arith.constant 0 : index
    %c0_20 = arith.constant 0 : index
    %94 = vector.load %arg6[%c0_19, %c0_20] : memref<8x72xf32, #tpu.memory_space<vmem>>, vector<8x72xf32>
    %c0_21 = arith.constant 0 : index
    %c0_22 = arith.constant 0 : index
    %95 = vector.load %arg7[%c0_21, %c0_22] : memref<8x1xf32, #tpu.memory_space<vmem>>, vector<8x1xf32>
    %96 = vector.extract_strided_slice %93 {offsets = [0, 121], sizes = [8, 7], strides = [1, 1]} : vector<8x128xf32> to vector<8x7xf32>
    %97 = vector.extract_strided_slice %93 {offsets = [0, 0], sizes = [8, 121], strides = [1, 1]} : vector<8x128xf32> to vector<8x121xf32>
    %98 = tpu.concatenate %96, %97 in 1 : vector<8x7xf32>, vector<8x121xf32> -> vector<8x128xf32>
    %99 = vector.extract_strided_slice %93 {offsets = [0, 122], sizes = [8, 6], strides = [1, 1]} : vector<8x128xf32> to vector<8x6xf32>
    %100 = vector.extract_strided_slice %93 {offsets = [0, 0], sizes = [8, 122], strides = [1, 1]} : vector<8x128xf32> to vector<8x122xf32>
    %101 = tpu.concatenate %99, %100 in 1 : vector<8x6xf32>, vector<8x122xf32> -> vector<8x128xf32>
    %102 = vector.extract_strided_slice %93 {offsets = [0, 123], sizes = [8, 5], strides = [1, 1]} : vector<8x128xf32> to vector<8x5xf32>
    %103 = vector.extract_strided_slice %93 {offsets = [0, 0], sizes = [8, 123], strides = [1, 1]} : vector<8x128xf32> to vector<8x123xf32>
    %104 = tpu.concatenate %102, %103 in 1 : vector<8x5xf32>, vector<8x123xf32> -> vector<8x128xf32>
    %105 = vector.extract_strided_slice %93 {offsets = [0, 127], sizes = [8, 1], strides = [1, 1]} : vector<8x128xf32> to vector<8x1xf32>
    %106 = vector.extract_strided_slice %93 {offsets = [0, 0], sizes = [8, 127], strides = [1, 1]} : vector<8x128xf32> to vector<8x127xf32>
    %107 = tpu.concatenate %105, %106 in 1 : vector<8x1xf32>, vector<8x127xf32> -> vector<8x128xf32>
    %108 = vector.extract_strided_slice %93 {offsets = [0, 1], sizes = [8, 127], strides = [1, 1]} : vector<8x128xf32> to vector<8x127xf32>
    %109 = vector.extract_strided_slice %93 {offsets = [0, 0], sizes = [8, 1], strides = [1, 1]} : vector<8x128xf32> to vector<8x1xf32>
    %110 = tpu.concatenate %108, %109 in 1 : vector<8x127xf32>, vector<8x1xf32> -> vector<8x128xf32>
    %111 = vector.extract_strided_slice %93 {offsets = [0, 5], sizes = [8, 123], strides = [1, 1]} : vector<8x128xf32> to vector<8x123xf32>
    %112 = vector.extract_strided_slice %93 {offsets = [0, 0], sizes = [8, 5], strides = [1, 1]} : vector<8x128xf32> to vector<8x5xf32>
    %113 = tpu.concatenate %111, %112 in 1 : vector<8x123xf32>, vector<8x5xf32> -> vector<8x128xf32>
    %114 = vector.extract_strided_slice %93 {offsets = [0, 6], sizes = [8, 122], strides = [1, 1]} : vector<8x128xf32> to vector<8x122xf32>
    %115 = vector.extract_strided_slice %93 {offsets = [0, 0], sizes = [8, 6], strides = [1, 1]} : vector<8x128xf32> to vector<8x6xf32>
    %116 = tpu.concatenate %114, %115 in 1 : vector<8x122xf32>, vector<8x6xf32> -> vector<8x128xf32>
    %117 = vector.extract_strided_slice %93 {offsets = [0, 7], sizes = [8, 121], strides = [1, 1]} : vector<8x128xf32> to vector<8x121xf32>
    %118 = vector.extract_strided_slice %93 {offsets = [0, 0], sizes = [8, 7], strides = [1, 1]} : vector<8x128xf32> to vector<8x7xf32>
    %119 = tpu.concatenate %117, %118 in 1 : vector<8x121xf32>, vector<8x7xf32> -> vector<8x128xf32>
    %120 = tpu.concatenate %98, %101, %104, %107, %93, %110, %113, %116, %119 in 0 : vector<8x128xf32>, vector<8x128xf32>, vector<8x128xf32>, vector<8x128xf32>, vector<8x128xf32>, vector<8x128xf32>, vector<8x128xf32>, vector<8x128xf32>, vector<8x128xf32> -> vector<72x128xf32>
    %cst_23 = arith.constant dense<0.000000e+00> : vector<8x128xf32>
    %121 = tpu.matmul %94, %120, %cst_23 {dimension_numbers = #tpu.dot_dimension_numbers<[1], [0], [0], [1], [0, 0, 1, 1], [], []>} : vector<8x72xf32>, vector<72x128xf32>, vector<8x128xf32> -> vector<8x128xf32>
    %122 = vector.broadcast %95 : vector<8x1xf32> to vector<8x128xf32>
    %123 = arith.addf %121, %122 : vector<8x128xf32>
    %cst_24 = arith.constant 0.000000e+00 : f32
    %124 = vector.broadcast %cst_24 : f32 to vector<8x128xf32>
    %125 = arith.maximumf %123, %124 : vector<8x128xf32>
    %c0_25 = arith.constant 0 : index
    %c0_26 = arith.constant 0 : index
    %126 = vector.load %arg14[%c0_25, %c0_26] : memref<128x128xf32, #tpu.memory_space<vmem>>, vector<128x128xf32>
    %cst_27 = arith.constant dense<0.000000e+00> : vector<8x128xf32>
    %127 = tpu.matmul %125, %126, %cst_27 {dimension_numbers = #tpu.dot_dimension_numbers<[1], [0], [0], [1], [0, 0, 1, 1], [], []>} : vector<8x128xf32>, vector<128x128xf32>, vector<8x128xf32> -> vector<8x128xf32>
    %c0_28 = arith.constant 0 : index
    %c0_29 = arith.constant 0 : index
    %128 = vector.load %arg8[%c0_28, %c0_29] : memref<16x72xf32, #tpu.memory_space<vmem>>, vector<16x72xf32>
    %c0_30 = arith.constant 0 : index
    %c0_31 = arith.constant 0 : index
    %129 = vector.load %arg9[%c0_30, %c0_31] : memref<16x1xf32, #tpu.memory_space<vmem>>, vector<16x1xf32>
    %130 = vector.extract_strided_slice %127 {offsets = [0, 117], sizes = [8, 11], strides = [1, 1]} : vector<8x128xf32> to vector<8x11xf32>
    %131 = vector.extract_strided_slice %127 {offsets = [0, 0], sizes = [8, 117], strides = [1, 1]} : vector<8x128xf32> to vector<8x117xf32>
    %132 = tpu.concatenate %130, %131 in 1 : vector<8x11xf32>, vector<8x117xf32> -> vector<8x128xf32>
    %133 = vector.extract_strided_slice %127 {offsets = [0, 118], sizes = [8, 10], strides = [1, 1]} : vector<8x128xf32> to vector<8x10xf32>
    %134 = vector.extract_strided_slice %127 {offsets = [0, 0], sizes = [8, 118], strides = [1, 1]} : vector<8x128xf32> to vector<8x118xf32>
    %135 = tpu.concatenate %133, %134 in 1 : vector<8x10xf32>, vector<8x118xf32> -> vector<8x128xf32>
    %136 = vector.extract_strided_slice %127 {offsets = [0, 119], sizes = [8, 9], strides = [1, 1]} : vector<8x128xf32> to vector<8x9xf32>
    %137 = vector.extract_strided_slice %127 {offsets = [0, 0], sizes = [8, 119], strides = [1, 1]} : vector<8x128xf32> to vector<8x119xf32>
    %138 = tpu.concatenate %136, %137 in 1 : vector<8x9xf32>, vector<8x119xf32> -> vector<8x128xf32>
    %139 = vector.extract_strided_slice %127 {offsets = [0, 127], sizes = [8, 1], strides = [1, 1]} : vector<8x128xf32> to vector<8x1xf32>
    %140 = vector.extract_strided_slice %127 {offsets = [0, 0], sizes = [8, 127], strides = [1, 1]} : vector<8x128xf32> to vector<8x127xf32>
    %141 = tpu.concatenate %139, %140 in 1 : vector<8x1xf32>, vector<8x127xf32> -> vector<8x128xf32>
    %142 = vector.extract_strided_slice %127 {offsets = [0, 1], sizes = [8, 127], strides = [1, 1]} : vector<8x128xf32> to vector<8x127xf32>
    %143 = vector.extract_strided_slice %127 {offsets = [0, 0], sizes = [8, 1], strides = [1, 1]} : vector<8x128xf32> to vector<8x1xf32>
    %144 = tpu.concatenate %142, %143 in 1 : vector<8x127xf32>, vector<8x1xf32> -> vector<8x128xf32>
    %145 = vector.extract_strided_slice %127 {offsets = [0, 9], sizes = [8, 119], strides = [1, 1]} : vector<8x128xf32> to vector<8x119xf32>
    %146 = vector.extract_strided_slice %127 {offsets = [0, 0], sizes = [8, 9], strides = [1, 1]} : vector<8x128xf32> to vector<8x9xf32>
    %147 = tpu.concatenate %145, %146 in 1 : vector<8x119xf32>, vector<8x9xf32> -> vector<8x128xf32>
    %148 = vector.extract_strided_slice %127 {offsets = [0, 10], sizes = [8, 118], strides = [1, 1]} : vector<8x128xf32> to vector<8x118xf32>
    %149 = vector.extract_strided_slice %127 {offsets = [0, 0], sizes = [8, 10], strides = [1, 1]} : vector<8x128xf32> to vector<8x10xf32>
    %150 = tpu.concatenate %148, %149 in 1 : vector<8x118xf32>, vector<8x10xf32> -> vector<8x128xf32>
    %151 = vector.extract_strided_slice %127 {offsets = [0, 11], sizes = [8, 117], strides = [1, 1]} : vector<8x128xf32> to vector<8x117xf32>
    %152 = vector.extract_strided_slice %127 {offsets = [0, 0], sizes = [8, 11], strides = [1, 1]} : vector<8x128xf32> to vector<8x11xf32>
    %153 = tpu.concatenate %151, %152 in 1 : vector<8x117xf32>, vector<8x11xf32> -> vector<8x128xf32>
    %154 = tpu.concatenate %132, %135, %138, %141, %127, %144, %147, %150, %153 in 0 : vector<8x128xf32>, vector<8x128xf32>, vector<8x128xf32>, vector<8x128xf32>, vector<8x128xf32>, vector<8x128xf32>, vector<8x128xf32>, vector<8x128xf32>, vector<8x128xf32> -> vector<72x128xf32>
    %cst_32 = arith.constant dense<0.000000e+00> : vector<16x128xf32>
    %155 = tpu.matmul %128, %154, %cst_32 {dimension_numbers = #tpu.dot_dimension_numbers<[1], [0], [0], [1], [0, 0, 1, 1], [], []>} : vector<16x72xf32>, vector<72x128xf32>, vector<16x128xf32> -> vector<16x128xf32>
    %156 = vector.broadcast %129 : vector<16x1xf32> to vector<16x128xf32>
    %157 = arith.addf %155, %156 : vector<16x128xf32>
    %cst_33 = arith.constant 0.000000e+00 : f32
    %158 = vector.broadcast %cst_33 : f32 to vector<16x128xf32>
    %159 = arith.maximumf %157, %158 : vector<16x128xf32>
    %c0_34 = arith.constant 0 : index
    %c0_35 = arith.constant 0 : index
    %160 = vector.load %arg15[%c0_34, %c0_35] : memref<128x384xf32, #tpu.memory_space<vmem>>, vector<128x384xf32>
    %cst_36 = arith.constant dense<0.000000e+00> : vector<16x384xf32>
    %161 = tpu.matmul %159, %160, %cst_36 {dimension_numbers = #tpu.dot_dimension_numbers<[1], [0], [0], [1], [0, 0, 1, 1], [], []>} : vector<16x128xf32>, vector<128x384xf32>, vector<16x384xf32> -> vector<16x384xf32>
    %c0_37 = arith.constant 0 : index
    %c0_38 = arith.constant 0 : index
    %162 = vector.load %arg10[%c0_37, %c0_38] : memref<1x144xf32, #tpu.memory_space<vmem>>, vector<1x144xf32>
    %c0_39 = arith.constant 0 : index
    %c0_40 = arith.constant 0 : index
    %163 = vector.load %arg11[%c0_39, %c0_40] : memref<1x1xf32, #tpu.memory_space<vmem>>, vector<1x1xf32>
    %164 = vector.extract_strided_slice %161 {offsets = [0, 365], sizes = [16, 19], strides = [1, 1]} : vector<16x384xf32> to vector<16x19xf32>
    %165 = vector.extract_strided_slice %161 {offsets = [0, 0], sizes = [16, 365], strides = [1, 1]} : vector<16x384xf32> to vector<16x365xf32>
    %166 = tpu.concatenate %164, %165 in 1 : vector<16x19xf32>, vector<16x365xf32> -> vector<16x384xf32>
    %167 = vector.extract_strided_slice %161 {offsets = [0, 366], sizes = [16, 18], strides = [1, 1]} : vector<16x384xf32> to vector<16x18xf32>
    %168 = vector.extract_strided_slice %161 {offsets = [0, 0], sizes = [16, 366], strides = [1, 1]} : vector<16x384xf32> to vector<16x366xf32>
    %169 = tpu.concatenate %167, %168 in 1 : vector<16x18xf32>, vector<16x366xf32> -> vector<16x384xf32>
    %170 = vector.extract_strided_slice %161 {offsets = [0, 367], sizes = [16, 17], strides = [1, 1]} : vector<16x384xf32> to vector<16x17xf32>
    %171 = vector.extract_strided_slice %161 {offsets = [0, 0], sizes = [16, 367], strides = [1, 1]} : vector<16x384xf32> to vector<16x367xf32>
    %172 = tpu.concatenate %170, %171 in 1 : vector<16x17xf32>, vector<16x367xf32> -> vector<16x384xf32>
    %173 = vector.extract_strided_slice %161 {offsets = [0, 383], sizes = [16, 1], strides = [1, 1]} : vector<16x384xf32> to vector<16x1xf32>
    %174 = vector.extract_strided_slice %161 {offsets = [0, 0], sizes = [16, 383], strides = [1, 1]} : vector<16x384xf32> to vector<16x383xf32>
    %175 = tpu.concatenate %173, %174 in 1 : vector<16x1xf32>, vector<16x383xf32> -> vector<16x384xf32>
    %176 = vector.extract_strided_slice %161 {offsets = [0, 1], sizes = [16, 383], strides = [1, 1]} : vector<16x384xf32> to vector<16x383xf32>
    %177 = vector.extract_strided_slice %161 {offsets = [0, 0], sizes = [16, 1], strides = [1, 1]} : vector<16x384xf32> to vector<16x1xf32>
    %178 = tpu.concatenate %176, %177 in 1 : vector<16x383xf32>, vector<16x1xf32> -> vector<16x384xf32>
    %179 = vector.extract_strided_slice %161 {offsets = [0, 17], sizes = [16, 367], strides = [1, 1]} : vector<16x384xf32> to vector<16x367xf32>
    %180 = vector.extract_strided_slice %161 {offsets = [0, 0], sizes = [16, 17], strides = [1, 1]} : vector<16x384xf32> to vector<16x17xf32>
    %181 = tpu.concatenate %179, %180 in 1 : vector<16x367xf32>, vector<16x17xf32> -> vector<16x384xf32>
    %182 = vector.extract_strided_slice %161 {offsets = [0, 18], sizes = [16, 366], strides = [1, 1]} : vector<16x384xf32> to vector<16x366xf32>
    %183 = vector.extract_strided_slice %161 {offsets = [0, 0], sizes = [16, 18], strides = [1, 1]} : vector<16x384xf32> to vector<16x18xf32>
    %184 = tpu.concatenate %182, %183 in 1 : vector<16x366xf32>, vector<16x18xf32> -> vector<16x384xf32>
    %185 = vector.extract_strided_slice %161 {offsets = [0, 19], sizes = [16, 365], strides = [1, 1]} : vector<16x384xf32> to vector<16x365xf32>
    %186 = vector.extract_strided_slice %161 {offsets = [0, 0], sizes = [16, 19], strides = [1, 1]} : vector<16x384xf32> to vector<16x19xf32>
    %187 = tpu.concatenate %185, %186 in 1 : vector<16x365xf32>, vector<16x19xf32> -> vector<16x384xf32>
    %188 = tpu.concatenate %166, %169, %172, %175, %161, %178, %181, %184, %187 in 0 : vector<16x384xf32>, vector<16x384xf32>, vector<16x384xf32>, vector<16x384xf32>, vector<16x384xf32>, vector<16x384xf32>, vector<16x384xf32>, vector<16x384xf32>, vector<16x384xf32> -> vector<144x384xf32>
    %cst_41 = arith.constant dense<0.000000e+00> : vector<1x384xf32>
    %189 = tpu.matmul %162, %188, %cst_41 {dimension_numbers = #tpu.dot_dimension_numbers<[1], [0], [0], [1], [0, 0, 1, 1], [], []>} : vector<1x144xf32>, vector<144x384xf32>, vector<1x384xf32> -> vector<1x384xf32>
    %190 = vector.broadcast %163 : vector<1x1xf32> to vector<1x384xf32>
    %191 = arith.addf %189, %190 : vector<1x384xf32>
    %192 = math.tanh %191 : vector<1x384xf32>
    %c0_42 = arith.constant 0 : index
    %c0_43 = arith.constant 0 : index
    %c0_44 = arith.constant 0 : index
    %193 = vector.load %arg16[%c0_42, %c0_43, %c0_44] : memref<1x1x384xf32, #tpu.memory_space<vmem>>, vector<1x1x384xf32>
    %194 = vector.shape_cast %193 : vector<1x1x384xf32> to vector<1x384xf32>
    %195 = vector.shape_cast %192 : vector<1x384xf32> to vector<1x1x384xf32>
    tpu.vector_store %arg16[%c0_42, %c0_43, %c0_44], %195 {strides = array<i32>} : memref<1x1x384xf32, #tpu.memory_space<vmem>>, vector<1x1x384xf32>,
    return
  }
  func.func @transform_0(%arg0: i32) -> (i32, i32, i32) {
    %c0_i32 = arith.constant 0 : i32
    %c0_i32_0 = arith.constant 0 : i32
    %c0_i32_1 = arith.constant 0 : i32
    return %arg0, %c0_i32, %c0_i32_0 : i32, i32, i32
  }
  func.func @transform_1(%arg0: i32) -> (i32, i32) {
    %c0_i32 = arith.constant 0 : i32
    %c0_i32_0 = arith.constant 0 : i32
    %c0_i32_1 = arith.constant 0 : i32
    return %c0_i32, %c0_i32_0 : i32, i32
  }
  func.func @transform_2(%arg0: i32) -> (i32, i32) {
    %c0_i32 = arith.constant 0 : i32
    %c0_i32_0 = arith.constant 0 : i32
    %c0_i32_1 = arith.constant 0 : i32
    return %c0_i32, %c0_i32_0 : i32, i32
  }
  func.func @transform_3(%arg0: i32) -> (i32, i32) {
    %c0_i32 = arith.constant 0 : i32
    %c0_i32_0 = arith.constant 0 : i32
    %c0_i32_1 = arith.constant 0 : i32
    return %c0_i32, %c0_i32_0 : i32, i32
  }
  func.func @transform_4(%arg0: i32) -> (i32, i32) {
    %c0_i32 = arith.constant 0 : i32
    %c0_i32_0 = arith.constant 0 : i32
    %c0_i32_1 = arith.constant 0 : i32
    return %c0_i32, %c0_i32_0 : i32, i32
  }
  func.func @transform_5(%arg0: i32) -> (i32, i32) {
    %c0_i32 = arith.constant 0 : i32
    %c0_i32_0 = arith.constant 0 : i32
    %c0_i32_1 = arith.constant 0 : i32
    return %c0_i32, %c0_i32_0 : i32, i32
  }
  func.func @transform_6(%arg0: i32) -> (i32, i32) {
    %c0_i32 = arith.constant 0 : i32
    %c0_i32_0 = arith.constant 0 : i32
    %c0_i32_1 = arith.constant 0 : i32
    return %c0_i32, %c0_i32_0 : i32, i32
  }
  func.func @transform_7(%arg0: i32) -> (i32, i32) {
    %c0_i32 = arith.constant 0 : i32
    %c0_i32_0 = arith.constant 0 : i32
    %c0_i32_1 = arith.constant 0 : i32
    return %c0_i32, %c0_i32_0 : i32, i32
  }
  func.func @transform_8(%arg0: i32) -> (i32, i32) {
    %c0_i32 = arith.constant 0 : i32
    %c0_i32_0 = arith.constant 0 : i32
    %c0_i32_1 = arith.constant 0 : i32
    return %c0_i32, %c0_i32_0 : i32, i32
  }
  func.func @transform_9(%arg0: i32) -> (i32, i32) {
    %c0_i32 = arith.constant 0 : i32
    %c0_i32_0 = arith.constant 0 : i32
    %c0_i32_1 = arith.constant 0 : i32
    return %c0_i32, %c0_i32_0 : i32, i32
  }
  func.func @transform_10(%arg0: i32) -> (i32, i32) {
    %c0_i32 = arith.constant 0 : i32
    %c0_i32_0 = arith.constant 0 : i32
    %c0_i32_1 = arith.constant 0 : i32
    return %c0_i32, %c0_i32_0 : i32, i32
  }
  func.func @transform_11(%arg0: i32) -> (i32, i32) {
    %c0_i32 = arith.constant 0 : i32
    %c0_i32_0 = arith.constant 0 : i32
    %c0_i32_1 = arith.constant 0 : i32
    return %c0_i32, %c0_i32_0 : i32, i32
  }
  func.func @transform_12(%arg0: i32) -> (i32, i32) {
    %c0_i32 = arith.constant 0 : i32
    %c0_i32_0 = arith.constant 0 : i32
    %c0_i32_1 = arith.constant 0 : i32
    return %c0_i32, %c0_i32_0 : i32, i32
  }
  func.func @transform_13(%arg0: i32) -> (i32, i32) {
    %c0_i32 = arith.constant 0 : i32
    %c0_i32_0 = arith.constant 0 : i32
    %c0_i32_1 = arith.constant 0 : i32
    return %c0_i32, %c0_i32_0 : i32, i32
  }
  func.func @transform_14(%arg0: i32) -> (i32, i32) {
    %c0_i32 = arith.constant 0 : i32
    %c0_i32_0 = arith.constant 0 : i32
    %c0_i32_1 = arith.constant 0 : i32
    return %c0_i32, %c0_i32_0 : i32, i32
  }
  func.func @transform_15(%arg0: i32) -> (i32, i32, i32) {
    %c0_i32 = arith.constant 0 : i32
    %c0_i32_0 = arith.constant 0 : i32
    %c0_i32_1 = arith.constant 0 : i32
    return %arg0, %c0_i32, %c0_i32_0 : i32, i32, i32
  }
}

</mosaic_0001>

<bundles_post_ra>
// kernel: forward.1
= control target key start
LH: loop header
LB: loop body
LE: loop exit
PB: predicated region body
PF: predicated region fallthrough
CT: control target
= control target key end

     0   :  { %s2882_s0 = inlined_call_operand.vmem [shape: f32[2,1,384], index: 0, kind: input, shape index: {}]   ;;  %s2883_s1 = inlined_call_operand.vmem [shape: f32[16,9], index: 1, kind: input, shape index: {}]   ;;  %s2884_s2 = inlined_call_operand.vmem [shape: f32[16,1], index: 2, kind: input, shape index: {}]   ;;  %s2885_s3 = inlined_call_operand.vmem [shape: f32[8,144], index: 3, kind: input, shape index: {}]   ;;  %s2886_s4 = inlined_call_operand.vmem [shape: f32[8,1], index: 4, kind: input, shape index: {}]   ;;  %s2887_s5 = inlined_call_operand.vmem [shape: f32[8,72], index: 5, kind: input, shape index: {}]   ;;  %s2888_s6 = inlined_call_operand.vmem [shape: f32[8,1], index: 6, kind: input, shape index: {}]   ;;  %s2889_s7 = inlined_call_operand.vmem [shape: f32[16,72], index: 7, kind: input, shape index: {}]   ;;  %s2890_s8 = inlined_call_operand.vmem [shape: f32[16,1], index: 8, kind: input, shape index: {}]   ;;  %s2891_s9 = inlined_call_operand.vmem [shape: f32[1,144], index: 9, kind: input, shape index: {}]   ;;  %s2892_s10 = inlined_call_operand.<no memory space> [shape: f32[1,1], index: 10, kind: input, shape index: {}]   ;;  %s2893_s11 = inlined_call_operand.hbm [shape: f32[384,128], index: 11, kind: input, shape index: {}]   ;;  %s2894_s12 = inlined_call_operand.vmem [shape: f32[128,128], index: 12, kind: input, shape index: {}]   ;;  %s2895_s13 = inlined_call_operand.vmem [shape: f32[128,128], index: 13, kind: input, shape index: {}]   ;;  %s2896_s14 = inlined_call_operand.hbm [shape: f32[128,384], index: 14, kind: input, shape index: {}]   ;;  %s2897_s15 = inlined_call_operand.vmem [shape: f32[2,1,384], index: 15, kind: output, shape index: {}]  }
   0x1   :  { %v20_v0 = vstv %s2892_s10 }
   0x2   :  { %21 = vst [vmem:[#allocation2] sm:$0x1] %v20_v0 }
   0x3   :  { %22 = vsyncpa [#allocation4], 0 }
   0x4   :  { %23 = vsyncpa [#allocation6], 0  ;;  %s2402_s20 = smov 0  }
   0x5 LB: > { %s421_s23 = sshll.u32 %s2893_s11, 4  ;;  %s1895_s24 = sadd.s32 4294967295, %s2290_s20   ;;  %s2290_s20 = sphi %s2402_s20, %s29_s20   ;;  %s422_s23 = int_to_ptr.hbm [resolvable:$true] %s421_s23 }
   0x6   : > { %p1897_p0 = scmp.ge.s32.totalorder %s2290_s20, 1  ;;  %p380_p1 = scmp.lt.s32.totalorder %s2290_s20, 3 }
   0x7   : > { %p1938_p2 = scmp.eq.s32.totalorder %s1895_s24, 0  ;;  %s2292_s25 = smov [#allocation3]  }
   0x8   : > { %p2413_p3 = pnand %p1897_p0, %p380_p1  ;;  %s423_s26 = sshll.u32 %s2292_s25, 4  ;;  %s424_s26 = int_to_ptr.vmem [resolvable:$true] %s423_s26 }
   0x9   : > { %s441_s29 = sshll.u32 %s2896_s14, 4  ;;  %s2293_s30 = smov [#allocation5]   ;;  %s442_s29 = int_to_ptr.hbm [resolvable:$true] %s441_s29 }
   0xa   : > { %p1931_p4 = pneg %p2413_p3  ;;  %s443_s16 = sshll.u32 %s2293_s30, 4  ;;  %s444_s16 = int_to_ptr.vmem [resolvable:$true] %s443_s16 }
   0xb   : > { %s2294_s17 = smov 128   ;;  %s2295_s18 = smov 8  }
   0xc   : > { %p1932_p5 = pnand %p1938_p2, %p1931_p4  ;;  %s2296_s19 = smov 384  }
   0xd   : > { %s2297_s21 = smov 24   ;;  %466 = sbr.rel (%p2413_p3) target bundleno = 2278 (0x8e6), region = 80 }
   0xe   : > { %1934 = dma.hbm_to_vmem [thread:$0]  (!%p1932_p5), %s422_s23, 6144, %s424_s26, [#allocation4], %s2294_s17, %s2294_s17, %s2295_s18  }
   0xf   : > { %1937 = dma.hbm_to_vmem [thread:$0]  (!%p1932_p5), %s442_s29, 6144, %s444_s16, [#allocation6], %s2296_s19, %s2296_s19, %s2297_s21  }
  0x12   : > { %2281 = dma.done.wait (%p1938_p2), [#allocation4], 6144  }
  0x13   : > { %2283 = vsyncadd (%p1938_p2), [#allocation4], 4294961152 }
  0x14   : > { %2285 = dma.done.wait (%p1938_p2), [#allocation6], 6144  }
  0x15   : > { %2287 = vsyncadd (%p1938_p2), [#allocation6], 4294961152  ;;  %p518_p6 = scmp.lt.s32.totalorder %s1895_s24, 1  ;;  %s2905_s26 = smov 17   ;;  %vm556_vm0 = vcmask 146432   ;;  %vm542_vm1 = vcmask 154624  }
  0x16   : > { %s2903_s27 = smov 18   ;;  %s2899_s28 = smov 19   ;;  %vm568_vm2 = vcmask 138240   ;;  %vm678_vm3 = vcmask 1040384   ;;  %v530_v23 = vld [vmem:[%s2884_s2 + $0x8] sm:$0xff]  ;;  %v529_v24 = vld [vmem:[%s2884_s2] sm:$0xff] }
  0x17   : > { %s2928_s24 = smov (!%p518_p6, %s1895_s24), 1  ;;  %s2301_s29 = smov 1   ;;  %vm682_vm4 = vcmask 1041408   ;;  %v2306_v28 = vmov 0   ;;  %vm580_vm5 = vcmask 7168   ;;  %vm591_vm6 = vcmask 1039360  }
  0x18   : > { %s2898_s22 = smul.u32 3, %s2928_s24  ;;  %s2302_s30 = smov 127   ;;  %2013 = vset.pattern.permute.xlu0 %v2306_v28  ;;  %2012 = vset.pattern.permute.xlu2 %v2306_v28  ;;  %vm603_vm7 = vcmask 908288   ;;  %vm686_vm8 = vcmask 1042432   ;;  %vm690_vm9 = vcmask 1043456   ;;  %vm615_vm10 = vcmask 900096  }
  0x19   : > { %s2907_s16 = smov 111   ;;  %s2909_s17 = smov 110   ;;  %2089 = vset.pattern.permute.xlu1 %v2306_v28  ;;  %vm694_vm11 = vcmask 1044480   ;;  %vm627_vm12 = vcmask 891904   ;;  %vm698_vm13 = vcmask 1045504   ;;  %vm702_vm14 = vcmask 1046528  }
  0x1a   : > { %s521_s10 = scalar_lea.vmem %s2882_s0, %s2898_s22  ;;  %s2901_s18 = smov 109   ;;  %vm716_vm15 = vcmask 72704  }
  0x1b   : > { %v526_v1 = vld [vmem:[%s521_s10] sm:$0x7]  ;;  %s2307_s25 = smov 119   ;;  %s2308_s10 = smov 118  }
  0x1c   : > { %v2437_v2 = vperm.slane %v526_v1, 2  ;;  %v2439_v3 = vperm.slane %v526_v1, 0  ;;  %v2446_v5 = vperm.slane %v526_v1, 1  ;;  %s2911_s19 = smov 10   ;;  %s2913_s21 = smov 9  }
  0x1d   : > { %s2318_s23 = smov 6  }
  0x1e   : > { %v1982_v4 = vpack.i.bf16 %v2439_v3, %v2437_v2  ;;  %v1997_v6 = vpack.i.bf16 %v2446_v5, %v2439_v3 }
  0x20   : > { %1983 = vrot.lane.b32.xlu1 %v1982_v4, %s2905_s26  ;;  %1978 = vrot.lane.b32.xlu0 %v1982_v4, %s2903_s27 }
  0x21   : > { %1988 = vrot.lane.b32.xlu2 %v1982_v4, %s2899_s28 }
  0x28   : > { %566 = vrot.lane.b32.xlu1 %v2446_v5, %s2905_s26  ;;  %554 = vrot.lane.b32.xlu0 %v2446_v5, %s2903_s27  ;;  %s2315_s26 = smov 121   ;;  %s2316_s27 = smov 5  }
  0x29   : > { %540 = vrot.lane.b32.xlu2 %v2446_v5, %s2899_s28  ;;  %s2914_s28 = smov 117  }
  0x30   : > { %578 = vrot.lane.b32.xlu1 %v2446_v5, %s2301_s29  ;;  %1993 = vrot.lane.b32.xlu0 %v1982_v4, %s2301_s29 }
  0x31   : > { %1998 = vrot.lane.b32.xlu2 %v1997_v6, %s2302_s30 }
  0x38   : > { %2003 = vrot.lane.b32.xlu1 %v1997_v6, %s2907_s16  ;;  %589 = vrot.lane.b32.xlu0 %v2437_v2, %s2302_s30 }
  0x39   : > { %601 = vrot.lane.b32.xlu2 %v2437_v2, %s2907_s16  ;;  %s2922_s16 = smov 17  }
  0x40   : > { %613 = vrot.lane.b32.xlu1 %v2437_v2, %s2909_s17  ;;  %2008 = vrot.lane.b32.xlu0 %v1997_v6, %s2909_s17 }
  0x41   : > { %621 = vrot.lane.b32.xlu2 %v2439_v3, %s2901_s18 }
  0x48   : > { %625 = vrot.lane.b32.xlu1 %v2437_v2, %s2901_s18  ;;  %623 = vrot.lane.b32.xlu0 %v2446_v5, %s2901_s18 }
  0x49   : > { %708 = vperm.xlu2 %2012, %v529_v24  }
  0x50   : > { %713 = vperm.xlu0 %2013, %v530_v23  }
  0x7b   : > { %v1989_v7 = vpop.permute.xlu2 %1988 }
  0x7c   : > { %v1991_v17 = vunpack.i.h.bf16 %v1989_v7  ;;  %v1990_v18 = vunpack.i.l.bf16 %v1989_v7 }
  0x7e   : > { %v548_v29 = vsel %vm542_vm1, %v1990_v18, %v1991_v17 }
  0x83   : > { %v541_v12 = vpop.permute.xlu2 %540 }
  0x84   : > { %v543_v31 = vsel %vm542_vm1, %v1991_v17, %v541_v12  ;;  %v544_v40 = vsel %vm542_vm1, %v541_v12, %v1990_v18 }
  0x8b   : > { %v2474_v19 = vpop.permute.xlu2 %1998 }
  0x8c   : > { %v2001_v36 = vunpack.i.h.bf16 %v2474_v19  ;;  %v2000_v37 = vunpack.i.l.bf16 %v2474_v19 }
  0x8e   : > { %v592_v49 = vsel %vm591_vm6, %v2000_v37, %v2001_v36 }
  0x8f   : > { %v658_v7 = vrot.slane %v592_v49, 3 }
  0x92   : > { %v1984_v8 = vpop.permute.xlu1 %1983  ;;  %v1979_v9 = vpop.permute.xlu0 %1978 }
  0x93   : > { %v1981_v15 = vunpack.i.h.bf16 %v1979_v9  ;;  %v1980_v16 = vunpack.i.l.bf16 %v1979_v9  ;;  %v1986_v20 = vunpack.i.h.bf16 %v1984_v8  ;;  %v1985_v21 = vunpack.i.l.bf16 %v1984_v8  ;;  %v602_v54 = vpop.permute.xlu2 %601 }
  0x95   : > { %v560_v22 = vsel %vm556_vm0, %v1980_v16, %v1981_v15  ;;  %v572_v34 = vsel %vm568_vm2, %v1985_v21, %v1986_v20 }
  0x96   : > { %v634_v35 = vrot.slane %v560_v22, 7  ;;  %v641_v45 = vrot.slane %v572_v34, 6 }
  0x98   : > { %v679_v47 = vsel %vm678_vm3, %v548_v29, %v634_v35 }
  0x99   : > { %v683_v62 = vsel %vm682_vm4, %v679_v47, %v641_v45 }
  0x9a   : > { %v567_v10 = vpop.permute.xlu1 %566  ;;  %v555_v11 = vpop.permute.xlu0 %554 }
  0x9b   : > { %v557_v25 = vsel %vm556_vm0, %v1981_v15, %v555_v11  ;;  %v558_v30 = vsel %vm556_vm0, %v555_v11, %v1980_v16  ;;  %v569_v38 = vsel %vm568_vm2, %v1986_v20, %v567_v10  ;;  %v570_v41 = vsel %vm568_vm2, %v567_v10, %v1985_v21  ;;  %v622_v22 = vpop.permute.xlu2 %621 }
  0x9c   : > { %v635_v39 = vrot.slane %v557_v25, 7  ;;  %v636_v42 = vrot.slane %v558_v30, 7  ;;  %v642_v48 = vrot.slane %v569_v38, 6  ;;  %v643_v50 = vrot.slane %v570_v41, 6  ;;  %v528_v41 = vld [vmem:[%s2883_s1 + $0x8] sm:$0xff] }
  0x9e   : > { %v680_v51 = vsel %vm678_vm3, %v543_v31, %v635_v39  ;;  %v681_v55 = vsel %vm678_vm3, %v544_v40, %v636_v42 }
  0x9f   : > { %v684_v63 = vsel %vm682_vm4, %v680_v51, %v642_v48  ;;  %v685_v6 = vsel %vm682_vm4, %v681_v55, %v643_v50 }
  0xa2   : > { %v579_v13 = vpop.permute.xlu1 %578  ;;  %v1994_v14 = vpop.permute.xlu0 %1993 }
  0xa3   : > { %v1996_v26 = vunpack.i.h.bf16 %v1994_v14  ;;  %v1995_v27 = vunpack.i.l.bf16 %v1994_v14  ;;  %v709_v42 = vpop.permute.xlu2 %708 }
  0xa5   : > { %v581_v43 = vsel %vm580_vm5, %v1996_v26, %v579_v13  ;;  %v584_v44 = vsel %vm580_vm5, %v1995_v27, %v1996_v26  ;;  %v582_v46 = vsel %vm580_vm5, %v579_v13, %v1995_v27 }
  0xa6   : > { %v649_v52 = vrot.slane %v581_v43, 5  ;;  %v648_v53 = vrot.slane %v584_v44, 5  ;;  %v650_v56 = vrot.slane %v582_v46, 5 }
  0xa8   : > { %v687_v8 = vsel %vm686_vm8, %v683_v62, %v648_v53  ;;  %v688_v9 = vsel %vm686_vm8, %v684_v63, %v649_v52  ;;  %v689_v13 = vsel %vm686_vm8, %v685_v6, %v650_v56  ;;  %v818_v6 = vld [vmem:[#allocation3 + $0x68] sm:$0xff]  ;;  %vm1082_vm8 = vcmask 130048  }
  0xa9   : > { %v691_v18 = vsel %vm690_vm9, %v687_v8, %v2439_v3  ;;  %v692_v23 = vsel %vm690_vm9, %v688_v9, %v2446_v5  ;;  %v693_v24 = vsel %vm690_vm9, %v689_v13, %v2437_v2  ;;  %v816_v8 = vld [vmem:[#allocation3 + $0x58] sm:$0xff]  ;;  %v851_v13 = vld [vmem:[#allocation3 + $0x170] sm:$0xff]  ;;  %vm1208_vm9 = vcmask 588800  }
  0xaa   : > { %v2004_v32 = vpop.permute.xlu1 %2003  ;;  %v590_v33 = vpop.permute.xlu0 %589  ;;  %v695_v34 = vsel %vm694_vm11, %v691_v18, %v658_v7  ;;  %v817_v7 = vld [vmem:[#allocation3 + $0x60] sm:$0xff]  ;;  %v836_v9 = vld [vmem:[#allocation3 + $0xf8] sm:$0xff] }
  0xab   : > { %v2006_v57 = vunpack.i.h.bf16 %v2004_v32  ;;  %v2005_v58 = vunpack.i.l.bf16 %v2004_v32  ;;  %v593_v59 = vsel %vm591_vm6, %v2001_v36, %v590_v33  ;;  %v596_v0 = vsel %vm591_vm6, %v590_v33, %v2000_v37  ;;  %v527_v36 = vld [vmem:[%s2883_s1] sm:$0xff] }
  0xac   : > { %v659_v11 = vrot.slane %v593_v59, 3  ;;  %v660_v14 = vrot.slane %v596_v0, 3  ;;  %v833_v18 = vld [vmem:[#allocation3 + $0xe0] sm:$0xff] }
  0xad   : > { %v604_v10 = vsel %vm603_vm7, %v2005_v58, %v2006_v57  ;;  %v605_v12 = vsel %vm603_vm7, %v2006_v57, %v602_v54  ;;  %v608_v15 = vsel %vm603_vm7, %v602_v54, %v2005_v58 }
  0xae   : > { %v665_v20 = vrot.slane %v604_v10, 2  ;;  %v666_v21 = vrot.slane %v605_v12, 2  ;;  %v667_v25 = vrot.slane %v608_v15, 2  ;;  %v696_v28 = vsel %vm694_vm11, %v692_v23, %v659_v11  ;;  %v852_v10 = vld [vmem:[#allocation3 + $0x178] sm:$0xff]  ;;  %v815_v11 = vld [vmem:[#allocation3 + $0x50] sm:$0xff]  ;;  %v834_v15 = vld [vmem:[#allocation3 + $0xe8] sm:$0xff] }
  0xaf   : > { %v697_v31 = vsel %vm694_vm11, %v693_v24, %v660_v14  ;;  %v835_v12 = vld [vmem:[#allocation3 + $0xf0] sm:$0xff]  ;;  %v814_v14 = vld [vmem:[#allocation3 + $0x48] sm:$0xff] }
  0xb0   : > { %v699_v2 = vsel %vm698_vm13, %v695_v34, %v665_v20  ;;  %v700_v35 = vsel %vm698_vm13, %v696_v28, %v666_v21  ;;  %v701_v39 = vsel %vm698_vm13, %v697_v31, %v667_v25  ;;  %v812_v20 = vld [vmem:[#allocation3 + $0x38] sm:$0xff]  ;;  %v811_v23 = vld [vmem:[#allocation3 + $0x30] sm:$0xff]  ;;  %v846_v28 = vld [vmem:[#allocation3 + $0x148] sm:$0xff] }
  0xb1   : > { %v832_v21 = vld [vmem:[#allocation3 + $0xd8] sm:$0xff]  ;;  %v831_v24 = vld [vmem:[#allocation3 + $0xd0] sm:$0xff] }
  0xb2   : > { %v614_v60 = vpop.permute.xlu1 %613  ;;  %v2009_v61 = vpop.permute.xlu0 %2008  ;;  %v847_v25 = vld [vmem:[#allocation3 + $0x150] sm:$0xff]  ;;  %v808_v31 = vld [vmem:[#allocation3 + $0x18] sm:$0xff] }
  0xb3   : > { %v2011_v1 = vunpack.i.h.bf16 %v2009_v61  ;;  %v2010_v4 = vunpack.i.l.bf16 %v2009_v61  ;;  %v827_v34 = vld [vmem:[#allocation3 + $0xb0] sm:$0xff] }
  0xb5   : > { %v616_v16 = vsel %vm615_vm10, %v2010_v4, %v2011_v1  ;;  %v617_v17 = vsel %vm615_vm10, %v2011_v1, %v614_v60  ;;  %v620_v19 = vsel %vm615_vm10, %v614_v60, %v2010_v4  ;;  %v820_v1 = vld [vmem:[#allocation3 + $0x78] sm:$0xff]  ;;  %v819_v4 = vld [vmem:[#allocation3 + $0x70] sm:$0xff] }
  0xb6   : > { %v672_v26 = vrot.slane %v616_v16, 1  ;;  %v673_v27 = vrot.slane %v617_v17, 1  ;;  %v674_v3 = vrot.slane %v620_v19, 1  ;;  %955 = vmatpush.msra.mxu3 %v820_v1  ;;  %v850_v16 = vld [vmem:[#allocation3 + $0x168] sm:$0xff]  ;;  %v813_v17 = vld [vmem:[#allocation3 + $0x40] sm:$0xff] }
  0xb7   : > { %v849_v19 = vld [vmem:[#allocation3 + $0x160] sm:$0xff] }
  0xb8   : > { %v703_v37 = vsel %vm702_vm14, %v699_v2, %v672_v26  ;;  %v704_v38 = vsel %vm702_vm14, %v700_v35, %v673_v27  ;;  %v705_v40 = vsel %vm702_vm14, %v701_v39, %v674_v3  ;;  %956 = vmatpush.msra.mxu3 %v819_v4  ;;  %v810_v26 = vld [vmem:[#allocation3 + $0x28] sm:$0xff]  ;;  %v845_v3 = vld [vmem:[#allocation3 + $0x140] sm:$0xff]  ;;  %v843_v2 = vld [vmem:[#allocation3 + $0x130] sm:$0xff] }
  0xb9   : > { %v830_v27 = vld [vmem:[#allocation3 + $0xc8] sm:$0xff]  ;;  %v825_v39 = vld [vmem:[#allocation3 + $0xa0] sm:$0xff] }
  0xba   : > { %v626_v29 = vpop.permute.xlu1 %625  ;;  %v624_v30 = vpop.permute.xlu0 %623  ;;  %957 = vmatpush.msra.mxu3 %v818_v6  ;;  %v806_v35 = vld [vmem:[#allocation3 + $0x8] sm:$0xff] }
  0xbb   : > { %v628_v32 = vsel %vm627_vm12, %v622_v22, %v624_v30  ;;  %v629_v33 = vsel %vm627_vm12, %v624_v30, %v626_v29  ;;  %v632_v5 = vsel %vm627_vm12, %v626_v29, %v622_v22  ;;  %v848_v22 = vld [vmem:[#allocation3 + $0x158] sm:$0xff]  ;;  %v809_v29 = vld [vmem:[#allocation3 + $0x20] sm:$0xff] }
  0xbc   : > { %1904 = vmatpush.msk.msra.mxu0 %vm678_vm3, %v628_v32  ;;  %1907 = vmatpush.msk.msra.mxu1 %vm678_vm3, %v629_v33  ;;  %v829_v30 = vld [vmem:[#allocation3 + $0xc0] sm:$0xff]  ;;  %v828_v32 = vld [vmem:[#allocation3 + $0xb8] sm:$0xff] }
  0xbd   : > { %1910 = vmatpush.msk.msra.mxu2 %vm678_vm3, %v632_v5  ;;  %958 = vmatpush.msra.mxu3 %v817_v7  ;;  %v844_v33 = vld [vmem:[#allocation3 + $0x138] sm:$0xff]  ;;  %v807_v5 = vld [vmem:[#allocation3 + $0x10] sm:$0xff] }
  0xbe   : > { %745 = vmatpush.msra.mxu0 %v703_v37  ;;  %768 = vmatpush.msra.mxu1 %v704_v38  ;;  %v842_v37 = vld [vmem:[#allocation3 + $0x128] sm:$0xff]  ;;  %v805_v38 = vld [vmem:[#allocation3] sm:$0xff] }
  0xbf   : > { %791 = vmatpush.msra.mxu2 %v705_v40  ;;  %1905 = vmatmul.msk.f32.vlgmr.msra.gmra.mxu0 %vm716_vm15, %v527_v36  ;;  %v841_v40 = vld [vmem:[#allocation3 + $0x120] sm:$0xff] }
  0xc0   : > { %1908 = vmatmul.msk.f32.vlgmr.msra.gmra.mxu1 %vm716_vm15, %v527_v36  ;;  %1911 = vmatmul.msk.f32.vlgmr.msra.gmra.mxu2 %vm716_vm15, %v527_v36  ;;  %v826_v36 = vld [vmem:[#allocation3 + $0xa8] sm:$0xff] }
  0xc1   : > { %959 = vmatpush.msra.mxu3 %v816_v8  ;;  %978 = vmatpush.msrb.mxu0 %v836_v9 }
  0xc2   : > { %v714_v50 = vpop.permute.xlu0 %713  ;;  %1001 = vmatpush.msrb.mxu1 %v852_v10 }
  0xc3   : > { %960 = vmatpush.msra.mxu3 %v815_v11  ;;  %979 = vmatpush.msrb.mxu0 %v835_v12 }
  0xc4   : > { %1002 = vmatpush.msrb.mxu1 %v851_v13 }
  0xc5   : > { %961 = vmatpush.msra.mxu3 %v814_v14  ;;  %980 = vmatpush.msrb.mxu0 %v834_v15 }
  0xc6   : > { %1003 = vmatpush.msrb.mxu1 %v850_v16 }
  0xc7   : > { %1906 = vmatmul.msk.f32.gmra.mxu0 %vm716_vm15, %v528_v41  ;;  %962 = vmatpush.msra.mxu3 %v813_v17 }
  0xc8   : > { %1912 = vmatmul.msk.f32.gmra.mxu2 %vm716_vm15, %v528_v41  ;;  %1909 = vmatmul.msk.f32.gmra.mxu1 %vm716_vm15, %v528_v41  ;;  %v824_v41 = vld [vmem:[#allocation3 + $0x98] sm:$0xff] }
  0xc9   : > { %981 = vmatpush.msrb.mxu0 %v833_v18  ;;  %1004 = vmatpush.msrb.mxu1 %v849_v19 }
  0xca   : > { %963 = vmatpush.msra.mxu3 %v812_v20 }
  0xcb   : > { %982 = vmatpush.msrb.mxu0 %v832_v21  ;;  %1005 = vmatpush.msrb.mxu1 %v848_v22 }
  0xcc   : > { %964 = vmatpush.msra.mxu3 %v811_v23 }
  0xcd   : > { %983 = vmatpush.msrb.mxu0 %v831_v24  ;;  %1006 = vmatpush.msrb.mxu1 %v847_v25 }
  0xce   : > { %965 = vmatpush.msra.mxu3 %v810_v26 }
  0xcf   : > { %984 = vmatpush.msrb.mxu0 %v830_v27  ;;  %1007 = vmatpush.msrb.mxu1 %v846_v28 }
  0xd0   : > { %966 = vmatpush.msra.mxu3 %v809_v29 }
  0xd1   : > { %985 = vmatpush.msrb.mxu0 %v829_v30  ;;  %1008 = vmatpush.msrb.mxu1 %v845_v3 }
  0xd2   : > { %967 = vmatpush.msra.mxu3 %v808_v31 }
  0xd3   : > { %986 = vmatpush.msrb.mxu0 %v828_v32  ;;  %1009 = vmatpush.msrb.mxu1 %v844_v33 }
  0xd4   : > { %968 = vmatpush.msra.mxu3 %v807_v5 }
  0xd5   : > { %987 = vmatpush.msrb.mxu0 %v827_v34  ;;  %1010 = vmatpush.msrb.mxu1 %v843_v2 }
  0xd6   : > { %969 = vmatpush.msra.mxu3 %v806_v35 }
  0xd7   : > { %988 = vmatpush.msrb.mxu0 %v826_v36  ;;  %1011 = vmatpush.msrb.mxu1 %v842_v37 }
  0xd8   : > { %970 = vmatpush.msra.mxu3 %v805_v38 }
  0xd9   : > { %989 = vmatpush.msrb.mxu0 %v825_v39  ;;  %1012 = vmatpush.msrb.mxu1 %v841_v40 }
  0xdb   : > { %990 = vmatpush.msrb.mxu0 %v824_v41 }
 0x13c   : > { %v747_v43 = vpop.f32.mrf.mxu0 }
 0x13d   : > { %v2541_v44 = vadd.f32 %v747_v43, %v709_v42  ;;  %v770_v45 = vpop.f32.mrf.mxu1  ;;  %v823_v43 = vld [vmem:[#allocation3 + $0x90] sm:$0xff] }
 0x13e   : > { %v2543_v46 = vadd.f32 %v770_v45, %v709_v42  ;;  %v839_v45 = vld [vmem:[#allocation3 + $0x110] sm:$0xff]  ;;  %991 = vmatpush.msrb.mxu0 %v823_v43 }
 0x13f   : > { %v799_v47 = vmax.f32 %v2541_v44, 0.0 }
 0x140   : > { %v800_v48 = vmax.f32 %v2543_v46, 0.0 }
 0x142   : > { %v2019_v49 = vpack.i.bf16 %v800_v48, %v799_v47 }
 0x143   : > { %v793_v51 = vpop.f32.mrf.mxu2 }
 0x144   : > { %v2551_v52 = vadd.f32 %v793_v51, %v709_v42  ;;  %2020 = vrot.lane.b32.xlu2 %v2019_v49, %s2909_s17  ;;  %2015 = vrot.lane.b32.xlu1 %v2019_v49, %s2302_s30  ;;  %v750_v53 = vpop.f32.mrf.mxu0  ;;  %v840_v42 = vld [vmem:[#allocation3 + $0x118] sm:$0xff]  ;;  %v821_v51 = vld [vmem:[#allocation3 + $0x80] sm:$0xff] }
 0x145   : > { %v2555_v54 = vadd.f32 %v750_v53, %v714_v50  ;;  %v773_v57 = vpop.f32.mrf.mxu1  ;;  %1013 = vmatpush.msrb.mxu1 %v840_v42  ;;  %v837_v53 = vld [vmem:[#allocation3 + $0x100] sm:$0xff] }
 0x146   : > { %v801_v55 = vmax.f32 %v2551_v52, 0.0  ;;  %v774_v59 = vadd.f32 %v773_v57, %v714_v50 }
 0x147   : > { %v802_v56 = vmax.f32 %v2555_v54, 0.0  ;;  %1014 = vmatpush.msrb.mxu1 %v839_v45 }
 0x148   : > { %v2566_v62 = vmax.f32 %v774_v59, 0.0 }
 0x149   : > { %v2034_v58 = vpack.i.bf16 %v802_v56, %v801_v55 }
 0x14b   : > { %v796_v60 = vpop.f32.mrf.mxu2  ;;  %2035 = vrot.lane.b32.xlu0 %v2034_v58, %s2909_s17 }
 0x14c   : > { %v797_v61 = vadd.f32 %v796_v60, %v714_v50  ;;  %2025 = vrot.lane.b32.xlu1 %v2019_v49, %s2901_s18  ;;  %2030 = vrot.lane.b32.xlu2 %v2034_v58, %s2302_s30  ;;  %v822_v49 = vld [vmem:[#allocation3 + $0x88] sm:$0xff] }
 0x14d   : > { %v838_v50 = vld [vmem:[#allocation3 + $0x108] sm:$0xff]  ;;  %992 = vmatpush.msrb.mxu0 %v822_v49 }
 0x14e   : > { %v2568_v63 = vmax.f32 %v797_v61, 0.0  ;;  %1015 = vmatpush.msrb.mxu1 %v838_v50 }
 0x14f   : > { %993 = vmatpush.msrb.mxu0 %v821_v51 }
 0x150   : > { %v2044_v0 = vpack.i.bf16 %v2568_v63, %v2566_v62  ;;  %1016 = vmatpush.msrb.mxu1 %v837_v53 }
 0x153   : > { %899 = vrot.lane.b32.xlu0 %v2566_v62, %s2909_s17 }
 0x154   : > { %2040 = vrot.lane.b32.xlu1 %v2034_v58, %s2901_s18  ;;  %2045 = vrot.lane.b32.xlu2 %v2044_v0, %s2302_s30 }
 0x15b   : > { %927 = vrot.lane.b32.xlu0 %v2568_v63, %s2901_s18 }
 0x15c   : > { %925 = vrot.lane.b32.xlu1 %v2566_v62, %s2901_s18  ;;  %901 = vrot.lane.b32.xlu2 %v2568_v63, %s2909_s17  ;;  %s2912_s18 = smov 11   ;;  %s2923_s17 = smov 18  }
 0x19e   : > { %v2021_v57 = vpop.permute.xlu2 %2020 }
 0x19f   : > { %v2023_v0 = vunpack.i.h.bf16 %v2021_v57  ;;  %v2022_v1 = vunpack.i.l.bf16 %v2021_v57 }
 0x1a1   : > { %v903_v10 = vsel %vm615_vm10, %v2022_v1, %v2023_v0 }
 0x1a6   : > { %v2031_v59 = vpop.permute.xlu2 %2030 }
 0x1a7   : > { %v2032_v14 = vunpack.i.l.bf16 %v2031_v59  ;;  %v2033_v31 = vunpack.i.h.bf16 %v2031_v59 }
 0x1ae   : > { %v2046_v15 = vpop.permute.xlu2 %2045 }
 0x1af   : > { %v2048_v23 = vunpack.i.h.bf16 %v2046_v15  ;;  %v2047_v24 = vunpack.i.l.bf16 %v2046_v15 }
 0x1b1   : > { %v873_v34 = vsel %vm591_vm6, %v2033_v31, %v2047_v24  ;;  %v874_v2 = vsel %vm591_vm6, %v2047_v24, %v2048_v23  ;;  %v884_v52 = vsel %vm591_vm6, %v2048_v23, %v2033_v31  ;;  %v1141_v31 = vld [vmem:[%s2894_s12 + $0x70] sm:$0xff] }
 0x1b2   : > { %v888_v45 = vmax.f32 %v802_v56, %v873_v34  ;;  %v889_v50 = vmax.f32 %v2566_v62, %v874_v2  ;;  %v890_v51 = vmax.f32 %v2568_v63, %v884_v52  ;;  %v1026_v62 = vld [vmem:[%s2886_s4] sm:$0xff]  ;;  %v1140_v2 = vld [vmem:[%s2894_s12 + $0x68] sm:$0xff] }
 0x1b3   : > { %v1136_v52 = vld [vmem:[%s2894_s12 + $0x48] sm:$0xff] }
 0x1b6   : > { %v2016_v58 = vpop.permute.xlu1 %2015  ;;  %v902_v46 = vpop.permute.xlu2 %901 }
 0x1b7   : > { %v2018_v60 = vunpack.i.h.bf16 %v2016_v58  ;;  %v2017_v61 = vunpack.i.l.bf16 %v2016_v58 }
 0x1b9   : > { %v871_v9 = vsel %vm591_vm6, %v2017_v61, %v2018_v60  ;;  %v872_v17 = vsel %vm591_vm6, %v2018_v60, %v2032_v14  ;;  %v883_v21 = vsel %vm591_vm6, %v2032_v14, %v2017_v61 }
 0x1ba   : > { %v885_v12 = vmax.f32 %v799_v47, %v871_v9  ;;  %v886_v25 = vmax.f32 %v800_v48, %v872_v17  ;;  %v887_v30 = vmax.f32 %v801_v55, %v883_v21 }
 0x1bd   : > { %v2036_v4 = vpop.permute.xlu0 %2035 }
 0x1be   : > { %v2026_v6 = vpop.permute.xlu1 %2025  ;;  %v2037_v18 = vunpack.i.l.bf16 %v2036_v4  ;;  %v2038_v28 = vunpack.i.h.bf16 %v2036_v4 }
 0x1bf   : > { %v2028_v7 = vunpack.i.h.bf16 %v2026_v6  ;;  %v2027_v8 = vunpack.i.l.bf16 %v2026_v6 }
 0x1c0   : > { %v904_v44 = vsel %vm615_vm10, %v2023_v0, %v2037_v18  ;;  %v915_v47 = vsel %vm615_vm10, %v2037_v18, %v2022_v1  ;;  %v916_v36 = vsel %vm615_vm10, %v902_v46, %v2038_v28 }
 0x1c1   : > { %v929_v11 = vsel %vm627_vm12, %v2027_v8, %v2028_v7 }
 0x1c2   : > { %v943_v13 = vmax.f32 %v903_v10, %v929_v11 }
 0x1c4   : > { %v949_v16 = vmax.f32 %v885_v12, %v943_v13 }
 0x1c5   : > { %v900_v19 = vpop.permute.xlu0 %899 }
 0x1c6   : > { %971 = vmatmul.f32.vlgmr.msra.gmra.mxu3 %v949_v16  ;;  %v2041_v20 = vpop.permute.xlu1 %2040  ;;  %v905_v55 = vsel %vm615_vm10, %v2038_v28, %v900_v19  ;;  %v906_v38 = vsel %vm615_vm10, %v900_v19, %v902_v46 }
 0x1c7   : > { %v2042_v22 = vunpack.i.l.bf16 %v2041_v20  ;;  %v2043_v32 = vunpack.i.h.bf16 %v2041_v20 }
 0x1c9   : > { %v930_v26 = vsel %vm627_vm12, %v2028_v7, %v2042_v22  ;;  %v941_v27 = vsel %vm627_vm12, %v2042_v22, %v2027_v8 }
 0x1ca   : > { %v944_v29 = vmax.f32 %v904_v44, %v930_v26  ;;  %v945_v3 = vmax.f32 %v915_v47, %v941_v27  ;;  %v1024_v27 = vld [vmem:[%s2885_s3] sm:$0xff] }
 0x1cc   : > { %v950_v33 = vmax.f32 %v886_v25, %v944_v29  ;;  %v951_v5 = vmax.f32 %v887_v30, %v945_v3  ;;  %v1025_v30 = vld [vmem:[%s2885_s3 + $0x8] sm:$0xff]  ;;  %v1142_v3 = vld [vmem:[%s2894_s12 + $0x78] sm:$0xff] }
 0x1cd   : > { %v928_v48 = vpop.permute.xlu0 %927  ;;  %1156 = vmatpush.msrb.mxu3 %v1142_v3  ;;  %v1381_v3 = vld [vmem:[#allocation5 + $0x150] sm:$0xff] }
 0x1ce   : > { %v926_v35 = vpop.permute.xlu1 %925  ;;  %v942_v37 = vsel %vm627_vm12, %v928_v48, %v2043_v32  ;;  %994 = vmatmul.f32.vlgmr.msrb.gmra.mxu0 %v950_v33  ;;  %1017 = vmatmul.f32.vlgmr.msrb.gmra.mxu1 %v951_v5 }
 0x1cf   : > { %v931_v39 = vsel %vm627_vm12, %v2043_v32, %v926_v35  ;;  %v932_v40 = vsel %vm627_vm12, %v926_v35, %v928_v48  ;;  %v948_v43 = vmax.f32 %v916_v36, %v942_v37  ;;  %1157 = vmatpush.msrb.mxu3 %v1141_v31  ;;  %v1139_v35 = vld [vmem:[%s2894_s12 + $0x60] sm:$0xff]  ;;  %v1138_v36 = vld [vmem:[%s2894_s12 + $0x58] sm:$0xff]  ;;  %v1137_v37 = vld [vmem:[%s2894_s12 + $0x50] sm:$0xff] }
 0x1d0   : > { %v946_v41 = vmax.f32 %v905_v55, %v931_v39  ;;  %v947_v42 = vmax.f32 %v906_v38, %v932_v40  ;;  %v1135_v55 = vld [vmem:[%s2894_s12 + $0x40] sm:$0xff]  ;;  %v1134_v38 = vld [vmem:[%s2894_s12 + $0x38] sm:$0xff]  ;;  %v1133_v39 = vld [vmem:[%s2894_s12 + $0x30] sm:$0xff] }
 0x1d1   : > { %v954_v57 = vmax.f32 %v890_v51, %v948_v43  ;;  %1158 = vmatpush.msrb.mxu3 %v1140_v2  ;;  %v1132_v40 = vld [vmem:[%s2894_s12 + $0x28] sm:$0xff]  ;;  %v1129_v43 = vld [vmem:[%s2894_s12 + $0x10] sm:$0xff] }
 0x1d2   : > { %v952_v49 = vmax.f32 %v888_v45, %v946_v41  ;;  %v953_v53 = vmax.f32 %v889_v50, %v947_v42  ;;  %v1131_v41 = vld [vmem:[%s2894_s12 + $0x20] sm:$0xff]  ;;  %v1130_v42 = vld [vmem:[%s2894_s12 + $0x18] sm:$0xff]  ;;  %v1128_v45 = vld [vmem:[%s2894_s12 + $0x8] sm:$0xff] }
 0x1d3   : > { %1159 = vmatpush.msrb.mxu3 %v1139_v35  ;;  %v1372_v2 = vld [vmem:[#allocation5 + $0x108] sm:$0xff]  ;;  %v1374_v35 = vld [vmem:[#allocation5 + $0x118] sm:$0xff] }
 0x1d4   : > { %974 = vmatmul.f32.gmra.mxu3 %v952_v49  ;;  %v1127_v49 = vld [vmem:[%s2894_s12] sm:$0xff] }
 0x1d5   : > { %1160 = vmatpush.msrb.mxu3 %v1138_v36 }
 0x1d6   : > { %997 = vmatmul.f32.gmra.mxu0 %v953_v53  ;;  %1020 = vmatmul.f32.gmra.mxu1 %v954_v57 }
 0x1d7   : > { %1161 = vmatpush.msrb.mxu3 %v1137_v37  ;;  %v1369_v37 = vld [vmem:[#allocation5 + $0xf0] sm:$0xff] }
 0x1d9   : > { %1162 = vmatpush.msrb.mxu3 %v1136_v52  ;;  %v1371_v52 = vld [vmem:[#allocation5 + $0x100] sm:$0xff] }
 0x1db   : > { %1163 = vmatpush.msrb.mxu3 %v1135_v55  ;;  %v1366_v55 = vld [vmem:[#allocation5 + $0xd8] sm:$0xff] }
 0x1dd   : > { %1164 = vmatpush.msrb.mxu3 %v1134_v38  ;;  %v1368_v38 = vld [vmem:[#allocation5 + $0xe8] sm:$0xff] }
 0x1df   : > { %1165 = vmatpush.msrb.mxu3 %v1133_v39 }
 0x1e1   : > { %1166 = vmatpush.msrb.mxu3 %v1132_v40 }
 0x1e3   : > { %1167 = vmatpush.msrb.mxu3 %v1131_v41  ;;  %v1363_v41 = vld [vmem:[#allocation5 + $0xc0] sm:$0xff] }
 0x1e5   : > { %1168 = vmatpush.msrb.mxu3 %v1130_v42  ;;  %v1365_v42 = vld [vmem:[#allocation5 + $0xd0] sm:$0xff] }
 0x1e7   : > { %1169 = vmatpush.msrb.mxu3 %v1129_v43  ;;  %v1360_v43 = vld [vmem:[#allocation5 + $0xa8] sm:$0xff] }
 0x1e9   : > { %1170 = vmatpush.msrb.mxu3 %v1128_v45  ;;  %v1362_v45 = vld [vmem:[#allocation5 + $0xb8] sm:$0xff] }
 0x1eb   : > { %1171 = vmatpush.msrb.mxu3 %v1127_v49  ;;  %v1357_v49 = vld [vmem:[#allocation5 + $0x90] sm:$0xff] }
 0x249   : > { %v972_v59 = vpop.f32.mrf.mxu3 }
 0x24b   : > { %v995_v58 = vpop.f32.mrf.mxu0  ;;  %v1018_v60 = vpop.f32.mrf.mxu1 }
 0x24c   : > { %v996_v61 = vadd.f32 %v995_v58, %v972_v59 }
 0x24e   : > { %v1019_v54 = vadd.f32 %v1018_v60, %v996_v61  ;;  %v1177_v61 = vld [vmem:[%s2888_s6] sm:$0xff] }
 0x253   : > { %v998_v0 = vpop.f32.mrf.mxu0  ;;  %v1021_v6 = vpop.f32.mrf.mxu1 }
 0x257   : > { %v975_v1 = vpop.f32.mrf.mxu3 }
 0x258   : > { %v999_v4 = vadd.f32 %v998_v0, %v975_v1  ;;  %v1248_v0 = vld [vmem:[%s2895_s13 + $0x78] sm:$0xff]  ;;  %v1247_v1 = vld [vmem:[%s2895_s13 + $0x70] sm:$0xff] }
 0x259   : > { %1249 = vmatpush.msra.mxu1 %v1248_v0 }
 0x25a   : > { %v1022_v56 = vadd.f32 %v1021_v6, %v999_v4  ;;  %v1246_v4 = vld [vmem:[%s2895_s13 + $0x68] sm:$0xff]  ;;  %v1245_v6 = vld [vmem:[%s2895_s13 + $0x60] sm:$0xff] }
 0x25b   : > { %1250 = vmatpush.msra.mxu1 %v1247_v1  ;;  %v1385_v1 = vld [vmem:[#allocation5 + $0x170] sm:$0xff] }
 0x25c   : > { %v2059_v7 = vpack.i.bf16 %v1019_v54, %v1022_v56 }
 0x25d   : > { %1251 = vmatpush.msra.mxu1 %v1246_v4  ;;  %v1348_v4 = vld [vmem:[#allocation5 + $0x48] sm:$0xff] }
 0x25e   : > { %2060 = vrot.lane.b32.xlu0 %v2059_v7, %s2302_s30  ;;  %2055 = vrot.lane.b32.xlu2 %v2059_v7, %s2307_s25 }
 0x25f   : > { %2050 = vrot.lane.b32.xlu1 %v2059_v7, %s2308_s10  ;;  %1252 = vmatpush.msra.mxu1 %v1245_v6  ;;  %v1350_v6 = vld [vmem:[#allocation5 + $0x58] sm:$0xff] }
 0x266   : > { %2075 = vrot.lane.b32.xlu0 %v2059_v7, %s2911_s19  ;;  %2070 = vrot.lane.b32.xlu2 %v2059_v7, %s2913_s21  ;;  %s2314_s21 = smov 122   ;;  %s2317_s19 = smov 7  }
 0x267   : > { %2065 = vrot.lane.b32.xlu1 %v2059_v7, %s2301_s29 }
 0x26e   : > { %1079 = vperm.xlu0 %2013, %v1026_v62   ;;  %2085 = vrot.lane.b32.xlu2 %v2059_v7, %s2914_s28  ;;  %v1242_v62 = vld [vmem:[%s2895_s13 + $0x48] sm:$0xff] }
 0x26f   : > { %2080 = vrot.lane.b32.xlu1 %v2059_v7, %s2912_s18 }
 0x2b8   : > { %v2056_v9 = vpop.permute.xlu2 %2055 }
 0x2b9   : > { %v2057_v11 = vunpack.i.l.bf16 %v2056_v9  ;;  %v2058_v13 = vunpack.i.h.bf16 %v2056_v9  ;;  %v1240_v9 = vld [vmem:[%s2895_s13 + $0x38] sm:$0xff] }
 0x2c0   : > { %v2071_v18 = vpop.permute.xlu2 %2070 }
 0x2c1   : > { %v2072_v20 = vunpack.i.l.bf16 %v2071_v18  ;;  %v2073_v22 = vunpack.i.h.bf16 %v2071_v18 }
 0x2c8   : > { %v2086_v47 = vpop.permute.xlu2 %2085 }
 0x2c9   : > { %v2087_v28 = vunpack.i.l.bf16 %v2086_v47  ;;  %v2088_v29 = vunpack.i.h.bf16 %v2086_v47 }
 0x2d0   : > { %v2061_v12 = vpop.permute.xlu0 %2060 }
 0x2d1   : > { %v2051_v63 = vpop.permute.xlu1 %2050  ;;  %v2062_v14 = vunpack.i.l.bf16 %v2061_v12  ;;  %v2063_v15 = vunpack.i.h.bf16 %v2061_v12  ;;  %v1238_v12 = vld [vmem:[%s2895_s13 + $0x28] sm:$0xff] }
 0x2d2   : > { %v2052_v8 = vunpack.i.l.bf16 %v2051_v63  ;;  %v2053_v10 = vunpack.i.h.bf16 %v2051_v63 }
 0x2d4   : > { %1086 = vmatpush.msrb.mxu2 %v2052_v8  ;;  %v1241_v8 = vld [vmem:[%s2895_s13 + $0x40] sm:$0xff] }
 0x2d6   : > { %1087 = vmatpush.msrb.mxu2 %v2053_v10 }
 0x2d8   : > { %1088 = vmatpush.msrb.mxu2 %v2057_v11  ;;  %v2076_v21 = vpop.permute.xlu0 %2075  ;;  %v1239_v11 = vld [vmem:[%s2895_s13 + $0x30] sm:$0xff] }
 0x2d9   : > { %v2066_v16 = vpop.permute.xlu1 %2065  ;;  %v2077_v23 = vunpack.i.l.bf16 %v2076_v21  ;;  %v2078_v25 = vunpack.i.h.bf16 %v2076_v21  ;;  %v1235_v21 = vld [vmem:[%s2895_s13 + $0x10] sm:$0xff] }
 0x2da   : > { %1089 = vmatpush.msrb.mxu2 %v2058_v13  ;;  %v2067_v17 = vunpack.i.l.bf16 %v2066_v16  ;;  %v2068_v19 = vunpack.i.h.bf16 %v2066_v16  ;;  %v1236_v16 = vld [vmem:[%s2895_s13 + $0x18] sm:$0xff] }
 0x2dc   : > { %1090 = vmatpush.msrb.mxu2 %v2062_v14 }
 0x2de   : > { %1091 = vmatpush.msrb.mxu2 %v2063_v15  ;;  %v1237_v15 = vld [vmem:[%s2895_s13 + $0x20] sm:$0xff] }
 0x2e0   : > { %1092 = vmatpush.msrb.mxu2 %v1022_v56  ;;  %v1080_v33 = vpop.permute.xlu0 %1079  ;;  %v1243_v56 = vld [vmem:[%s2895_s13 + $0x50] sm:$0xff] }
 0x2e1   : > { %v2081_v24 = vpop.permute.xlu1 %2080 }
 0x2e2   : > { %1093 = vmatpush.msrb.mxu2 %v1019_v54  ;;  %v2082_v44 = vunpack.i.l.bf16 %v2081_v24  ;;  %v2083_v26 = vunpack.i.h.bf16 %v2081_v24  ;;  %v1244_v54 = vld [vmem:[%s2895_s13 + $0x58] sm:$0xff] }
 0x2e3   : > { %1253 = vmatpush.msra.mxu1 %v1244_v54  ;;  %v1382_v54 = vld [vmem:[#allocation5 + $0x158] sm:$0xff] }
 0x2e4   : > { %1094 = vmatpush.msrb.mxu2 %v2067_v17 }
 0x2e5   : > { %1254 = vmatpush.msra.mxu1 %v1243_v56  ;;  %v1379_v56 = vld [vmem:[#allocation5 + $0x140] sm:$0xff] }
 0x2e6   : > { %1095 = vmatpush.msrb.mxu2 %v2068_v19  ;;  %v1176_v19 = vld [vmem:[%s2887_s5] sm:$0xff] }
 0x2e7   : > { %1255 = vmatpush.msra.mxu1 %v1242_v62  ;;  %v1270_v62 = vld [vmem:[%s2889_s7 + $0x8] sm:$0xff] }
 0x2e8   : > { %1096 = vmatpush.msrb.mxu2 %v2072_v20 }
 0x2e9   : > { %1256 = vmatpush.msra.mxu1 %v1241_v8  ;;  %v1370_v8 = vld [vmem:[#allocation5 + $0xf8] sm:$0xff] }
 0x2ea   : > { %1097 = vmatpush.msrb.mxu2 %v2073_v22  ;;  %v1234_v22 = vld [vmem:[%s2895_s13 + $0x8] sm:$0xff] }
 0x2eb   : > { %1257 = vmatpush.msra.mxu1 %v1240_v9  ;;  %v1367_v9 = vld [vmem:[#allocation5 + $0xe0] sm:$0xff] }
 0x2ec   : > { %1098 = vmatpush.msrb.mxu2 %v2077_v23  ;;  %v1233_v23 = vld [vmem:[%s2895_s13] sm:$0xff] }
 0x2ed   : > { %1258 = vmatpush.msra.mxu1 %v1239_v11  ;;  %v1361_v11 = vld [vmem:[#allocation5 + $0xb0] sm:$0xff] }
 0x2ee   : > { %1099 = vmatpush.msrb.mxu2 %v2078_v25 }
 0x2ef   : > { %1259 = vmatpush.msra.mxu1 %v1238_v12  ;;  %v1358_v12 = vld [vmem:[#allocation5 + $0x98] sm:$0xff] }
 0x2f0   : > { %1100 = vmatpush.msrb.mxu2 %v2082_v44 }
 0x2f1   : > { %1260 = vmatpush.msra.mxu1 %v1237_v15  ;;  %v1349_v15 = vld [vmem:[#allocation5 + $0x50] sm:$0xff] }
 0x2f2   : > { %1101 = vmatpush.msrb.mxu2 %v2083_v26 }
 0x2f3   : > { %1102 = vmatmul.f32.vlgmr.msrb.gmra.mxu2 %v1024_v27  ;;  %1261 = vmatpush.msra.mxu1 %v1236_v16  ;;  %v1271_v27 = vld [vmem:[%s2890_s8] sm:$0xff]  ;;  %v1345_v16 = vld [vmem:[#allocation5 + $0x30] sm:$0xff] }
 0x2f4   : > { %1120 = vmatpush.msra.mxu2 %v2087_v28  ;;  %v1272_v28 = vld [vmem:[%s2890_s8 + $0x8] sm:$0xff] }
 0x2f5   : > { %1262 = vmatpush.msra.mxu1 %v1235_v21  ;;  %v1344_v21 = vld [vmem:[#allocation5 + $0x28] sm:$0xff] }
 0x2f6   : > { %1121 = vmatpush.msra.mxu2 %v2088_v29  ;;  %v1384_v29 = vld [vmem:[#allocation5 + $0x168] sm:$0xff] }
 0x2f7   : > { %1263 = vmatpush.msra.mxu1 %v1234_v22  ;;  %v1339_v22 = vld [vmem:[#allocation5] sm:$0xff] }
 0x2f9   : > { %1264 = vmatpush.msra.mxu1 %v1233_v23  ;;  %v1340_v23 = vld [vmem:[#allocation5 + $0x8] sm:$0xff] }
 0x2fb   : > { %1913 = vmatmul.msk.f32.vlgmr.msra.gmra.mxu2 %vm1082_vm8, %v1025_v30  ;;  %v1386_v30 = vld [vmem:[#allocation5 + $0x178] sm:$0xff] }
 0x2fc   : > { %1433 = vmatpush.msra.mxu3 %v1386_v30 }
 0x376   : > { %v1103_v32 = vpop.f32.mrf.mxu2 }
 0x377   : > { %v1104_v5 = vadd.f32 %v1103_v32, %v1080_v33  ;;  %v1383_v32 = vld [vmem:[#allocation5 + $0x160] sm:$0xff]  ;;  %v1378_v33 = vld [vmem:[#allocation5 + $0x138] sm:$0xff] }
 0x378   : > { %1434 = vmatpush.msra.mxu3 %v1383_v32 }
 0x37e   : > { %v1123_v46 = vpop.f32.mrf.mxu2 }
 0x37f   : > { %v1124_v48 = vadd.f32 %v1123_v46, %v1104_v5  ;;  %v1380_v5 = vld [vmem:[#allocation5 + $0x148] sm:$0xff] }
 0x380   : > { %1435 = vmatpush.msra.mxu3 %v1380_v5 }
 0x381   : > { %v1126_v34 = vmax.f32 %v1124_v48, 0.0  ;;  %v1375_v48 = vld [vmem:[#allocation5 + $0x120] sm:$0xff] }
 0x383   : > { %1151 = vrot.lane.b32.xlu0 %v1126_v34, %s2914_s28  ;;  %1148 = vrot.lane.b32.xlu2 %v1126_v34, %s2308_s10  ;;  %s2313_s28 = smov 123  }
 0x384   : > { %1144 = vrot.lane.b32.xlu1 %v1126_v34, %s2302_s30 }
 0x3dd   : > { %v1149_v50 = vpop.permute.xlu2 %1148 }
 0x3f5   : > { %v1152_v51 = vpop.permute.xlu0 %1151 }
 0x3f6   : > { %v1154_v53 = vmax.f32 %v1149_v50, %v1152_v51  ;;  %v1145_v57 = vpop.permute.xlu1 %1144  ;;  %v1359_v50 = vld [vmem:[#allocation5 + $0xa0] sm:$0xff] }
 0x3f7   : > { %v1147_v58 = vmax.f32 %v1126_v34, %v1145_v57  ;;  %v1377_v34 = vld [vmem:[#allocation5 + $0x130] sm:$0xff]  ;;  %v1356_v57 = vld [vmem:[#allocation5 + $0x88] sm:$0xff] }
 0x3f8   : > { %1436 = vmatpush.msra.mxu3 %v1377_v34 }
 0x3f9   : > { %v1155_v59 = vmax.f32 %v1147_v58, %v1154_v53  ;;  %v1354_v53 = vld [vmem:[#allocation5 + $0x78] sm:$0xff] }
 0x3fa   : > { %1437 = vmatpush.msra.mxu3 %v1374_v35 }
 0x3fb   : > { %1172 = vmatmul.f32.vlgmr.msrb.gmra.mxu3 %v1155_v59  ;;  %v1351_v59 = vld [vmem:[#allocation5 + $0x60] sm:$0xff] }
 0x3fc   : > { %1438 = vmatpush.msra.mxu3 %v1371_v52 }
 0x3fe   : > { %1439 = vmatpush.msra.mxu3 %v1368_v38 }
 0x400   : > { %1440 = vmatpush.msra.mxu3 %v1365_v42 }
 0x402   : > { %1441 = vmatpush.msra.mxu3 %v1362_v45 }
 0x404   : > { %1442 = vmatpush.msra.mxu3 %v1359_v50 }
 0x406   : > { %1443 = vmatpush.msra.mxu3 %v1356_v57 }
 0x47e   : > { %v1173_v60 = vpop.f32.mrf.mxu3 }
 0x47f   : > { %1194 = vrot.lane.b32.xlu0 %v1173_v60, %s2313_s28  ;;  %1197 = vrot.lane.b32.xlu2 %v1173_v60, %s2314_s21 }
 0x480   : > { %1200 = vrot.lane.b32.xlu1 %v1173_v60, %s2315_s26  ;;  %s2916_s26 = smov 117  }
 0x487   : > { %1185 = vrot.lane.b32.xlu0 %v1173_v60, %s2316_s27  ;;  %1188 = vrot.lane.b32.xlu2 %v1173_v60, %s2301_s29  ;;  %s2917_s27 = smov 9  }
 0x488   : > { %1191 = vrot.lane.b32.xlu1 %v1173_v60, %s2302_s30 }
 0x48f   : > { %1205 = vperm.xlu0 %2013, %v1177_v61   ;;  %1179 = vrot.lane.b32.xlu2 %v1173_v60, %s2317_s19  ;;  %s2918_s19 = smov 11   ;;  %v1353_v61 = vld [vmem:[#allocation5 + $0x70] sm:$0xff] }
 0x490   : > { %1182 = vrot.lane.b32.xlu1 %v1173_v60, %s2318_s23  ;;  %s2919_s23 = smov 10   ;;  %1444 = vmatpush.msra.mxu3 %v1353_v61 }
 0x492   : > { %1445 = vmatpush.msra.mxu3 %v1350_v6 }
 0x4d9   : > { %v1198_v7 = vpop.permute.xlu2 %1197 }
 0x4e1   : > { %v1189_v13 = vpop.permute.xlu2 %1188 }
 0x4e9   : > { %v1180_v20 = vpop.permute.xlu2 %1179 }
 0x4f1   : > { %v1195_v10 = vpop.permute.xlu0 %1194 }
 0x4f2   : > { %v1201_v63 = vpop.permute.xlu1 %1200 }
 0x4f3   : > { %1219 = vmatpush.msra.mxu0 %v1201_v63  ;;  %v1373_v63 = vld [vmem:[#allocation5 + $0x110] sm:$0xff] }
 0x4f5   : > { %1220 = vmatpush.msra.mxu0 %v1198_v7  ;;  %v1376_v7 = vld [vmem:[#allocation5 + $0x128] sm:$0xff] }
 0x4f7   : > { %1221 = vmatpush.msra.mxu0 %v1195_v10  ;;  %v1364_v10 = vld [vmem:[#allocation5 + $0xc8] sm:$0xff] }
 0x4f9   : > { %v1186_v17 = vpop.permute.xlu0 %1185 }
 0x4fa   : > { %v1192_v14 = vpop.permute.xlu1 %1191 }
 0x4fb   : > { %1222 = vmatpush.msra.mxu0 %v1192_v14  ;;  %v1352_v14 = vld [vmem:[#allocation5 + $0x68] sm:$0xff] }
 0x4fd   : > { %1223 = vmatpush.msra.mxu0 %v1173_v60  ;;  %v1269_v60 = vld [vmem:[%s2889_s7] sm:$0xff] }
 0x4ff   : > { %1224 = vmatpush.msra.mxu0 %v1189_v13  ;;  %v1355_v13 = vld [vmem:[#allocation5 + $0x80] sm:$0xff] }
 0x501   : > { %1225 = vmatpush.msra.mxu0 %v1186_v17  ;;  %v1206_v24 = vpop.permute.xlu0 %1205  ;;  %v1346_v17 = vld [vmem:[#allocation5 + $0x38] sm:$0xff] }
 0x502   : > { %v1183_v18 = vpop.permute.xlu1 %1182 }
 0x503   : > { %1226 = vmatpush.msra.mxu0 %v1183_v18  ;;  %v1347_v18 = vld [vmem:[#allocation5 + $0x40] sm:$0xff] }
 0x504   : > { %1446 = vmatpush.msra.mxu3 %v1347_v18 }
 0x505   : > { %1227 = vmatpush.msra.mxu0 %v1180_v20  ;;  %v1343_v20 = vld [vmem:[#allocation5 + $0x20] sm:$0xff] }
 0x506   : > { %1914 = vmatmul.msk.f32.vlgmr.msra.gmra.mxu0 %vm1208_vm9, %v1176_v19  ;;  %v1342_v19 = vld [vmem:[#allocation5 + $0x18] sm:$0xff]  ;;  %1447 = vmatpush.msra.mxu3 %v1344_v21 }
 0x507   : > { %1387 = vmatpush.msrb.mxu0 %v1384_v29 }
 0x509   : > { %1388 = vmatpush.msrb.mxu0 %v1381_v3 }
 0x50b   : > { %1389 = vmatpush.msrb.mxu0 %v1378_v33 }
 0x50d   : > { %1390 = vmatpush.msrb.mxu0 %v1375_v48 }
 0x50f   : > { %1391 = vmatpush.msrb.mxu0 %v1372_v2 }
 0x511   : > { %1392 = vmatpush.msrb.mxu0 %v1369_v37 }
 0x513   : > { %1393 = vmatpush.msrb.mxu0 %v1366_v55  ;;  %v1457_v55 = vld [vmem:[#allocation2] sm:$0x1] }
 0x515   : > { %1394 = vmatpush.msrb.mxu0 %v1363_v41 }
 0x517   : > { %1395 = vmatpush.msrb.mxu0 %v1360_v43 }
 0x519   : > { %1396 = vmatpush.msrb.mxu0 %v1357_v49 }
 0x51b   : > { %1397 = vmatpush.msrb.mxu0 %v1354_v53 }
 0x51d   : > { %1398 = vmatpush.msrb.mxu0 %v1351_v59 }
 0x51f   : > { %1399 = vmatpush.msrb.mxu0 %v1348_v4 }
 0x521   : > { %1400 = vmatpush.msrb.mxu0 %v1345_v16 }
 0x523   : > { %1401 = vmatpush.msrb.mxu0 %v1342_v19 }
 0x525   : > { %1402 = vmatpush.msrb.mxu0 %v1339_v22 }
 0x583   : > { %v1229_v25 = vpop.f32.mrf.mxu0 }
 0x584   : > { %v1230_v44 = vadd.f32 %v1229_v25, %v1206_v24  ;;  %v1341_v24 = vld [vmem:[#allocation5 + $0x10] sm:$0xff] }
 0x585   : > { %1448 = vmatpush.msra.mxu3 %v1341_v24 }
 0x586   : > { %v1232_v47 = vmax.f32 %v1230_v44, 0.0 }
 0x588   : > { %1265 = vmatmul.f32.vlgmr.msra.gmra.mxu1 %v1232_v47 }
 0x605   : > { %v1266_v26 = vpop.f32.mrf.mxu1 }
 0x606   : > { %1289 = vrot.lane.b32.xlu0 %v1266_v26, %s2307_s25  ;;  %1292 = vrot.lane.b32.xlu2 %v1266_v26, %s2308_s10  ;;  %s2926_s25 = smul.u32 3, %s2928_s24 }
 0x607   : > { %1295 = vrot.lane.b32.xlu1 %v1266_v26, %s2916_s26  ;;  %s2920_s26 = smov 110  }
 0x608   : > { %s525_s22 = scalar_lea.vmem %s2897_s15, %s2926_s25 }
 0x60e   : > { %1280 = vrot.lane.b32.xlu0 %v1266_v26, %s2917_s27  ;;  %1283 = vrot.lane.b32.xlu2 %v1266_v26, %s2301_s29  ;;  %s2921_s27 = smov 111  }
 0x60f   : > { %1286 = vrot.lane.b32.xlu1 %v1266_v26, %s2302_s30 }
 0x616   : > { %1300 = vperm.xlu0 %2013, %v1271_v27   ;;  %1274 = vrot.lane.b32.xlu2 %v1266_v26, %s2918_s19  ;;  %s2925_s19 = smov 19  }
 0x617   : > { %1277 = vrot.lane.b32.xlu1 %v1266_v26, %s2919_s23 }
 0x61f   : > { %1305 = vperm.xlu1 %2089, %v1272_v28  }
 0x660   : > { %v1293_v31 = vpop.permute.xlu2 %1292 }
 0x668   : > { %v1284_v39 = vpop.permute.xlu2 %1283 }
 0x670   : > { %v1275_v0 = vpop.permute.xlu2 %1274 }
 0x678   : > { %v1290_v36 = vpop.permute.xlu0 %1289 }
 0x679   : > { %v1296_v46 = vpop.permute.xlu1 %1295 }
 0x67a   : > { %1321 = vmatpush.msrb.mxu2 %v1296_v46 }
 0x67c   : > { %1322 = vmatpush.msrb.mxu2 %v1293_v31 }
 0x67e   : > { %1323 = vmatpush.msrb.mxu2 %v1290_v36 }
 0x680   : > { %v1281_v51 = vpop.permute.xlu0 %1280 }
 0x681   : > { %v1287_v40 = vpop.permute.xlu1 %1286 }
 0x682   : > { %1324 = vmatpush.msrb.mxu2 %v1287_v40 }
 0x684   : > { %1325 = vmatpush.msrb.mxu2 %v1266_v26 }
 0x686   : > { %1326 = vmatpush.msrb.mxu2 %v1284_v39 }
 0x688   : > { %1327 = vmatpush.msrb.mxu2 %v1281_v51  ;;  %v1301_v25 = vpop.permute.xlu0 %1300 }
 0x689   : > { %v1278_v58 = vpop.permute.xlu1 %1277 }
 0x68a   : > { %1328 = vmatpush.msrb.mxu2 %v1278_v58 }
 0x68c   : > { %1329 = vmatpush.msrb.mxu2 %v1275_v0 }
 0x68d   : > { %1915 = vmatmul.msk.f32.vlgmr.msrb.gmra.mxu2 %vm1208_vm9, %v1269_v60 }
 0x68e   : > { %1410 = vmatpush.msra.mxu2 %v1385_v1 }
 0x690   : > { %1411 = vmatpush.msra.mxu2 %v1382_v54 }
 0x691   : > { %v1306_v27 = vpop.permute.xlu1 %1305 }
 0x692   : > { %1412 = vmatpush.msra.mxu2 %v1379_v56 }
 0x694   : > { %1413 = vmatpush.msra.mxu2 %v1376_v7 }
 0x695   : > { %1916 = vmatmul.msk.f32.gmra.mxu2 %vm1208_vm9, %v1270_v62 }
 0x696   : > { %1414 = vmatpush.msra.mxu2 %v1373_v63 }
 0x698   : > { %1415 = vmatpush.msra.mxu2 %v1370_v8 }
 0x69a   : > { %1416 = vmatpush.msra.mxu2 %v1367_v9 }
 0x69c   : > { %1417 = vmatpush.msra.mxu2 %v1364_v10 }
 0x69e   : > { %1418 = vmatpush.msra.mxu2 %v1361_v11 }
 0x6a0   : > { %1419 = vmatpush.msra.mxu2 %v1358_v12 }
 0x6a2   : > { %1420 = vmatpush.msra.mxu2 %v1355_v13 }
 0x6a4   : > { %1421 = vmatpush.msra.mxu2 %v1352_v14 }
 0x6a6   : > { %1422 = vmatpush.msra.mxu2 %v1349_v15 }
 0x6a8   : > { %1423 = vmatpush.msra.mxu2 %v1346_v17 }
 0x6aa   : > { %1424 = vmatpush.msra.mxu2 %v1343_v20 }
 0x6ac   : > { %1425 = vmatpush.msra.mxu2 %v1340_v23 }
 0x710   : > { %v1331_v44 = vpop.f32.mrf.mxu2 }
 0x711   : > { %v1332_v47 = vadd.f32 %v1331_v44, %v1301_v25 }
 0x713   : > { %v1337_v26 = vmax.f32 %v1332_v47, 0.0 }
 0x715   : > { %1403 = vmatmul.f32.vlgmr.msrb.gmra.mxu0 %v1337_v26  ;;  %1426 = vmatmul.f32.vlgmr.msra.gmra.mxu2 %v1337_v26 }
 0x716   : > { %1449 = vmatmul.f32.vlgmr.msra.gmra.mxu3 %v1337_v26 }
 0x718   : > { %v1334_v28 = vpop.f32.mrf.mxu2 }
 0x719   : > { %v1335_v29 = vadd.f32 %v1334_v28, %v1306_v27 }
 0x71b   : > { %v1338_v30 = vmax.f32 %v1335_v29, 0.0 }
 0x71d   : > { %1406 = vmatmul.f32.gmra.mxu0 %v1338_v30  ;;  %1429 = vmatmul.f32.gmra.mxu2 %v1338_v30 }
 0x71e   : > { %1452 = vmatmul.f32.gmra.mxu3 %v1338_v30 }
 0x792   : > { %v2758_v3 = vpop.f32.mrf.mxu0 }
 0x798   : > { %v2760_v31 = vpop.f32.mrf.mxu2 }
 0x799   : > { %v2762_v32 = vpop.f32.mrf.mxu3  ;;  %v2105_v35 = vpack.i.bf16 %v2760_v31, %v2758_v3 }
 0x79a   : > { %v2090_v33 = vpack.i.bf16 %v2762_v32, %v2760_v31  ;;  %v2767_v5 = vpop.f32.mrf.mxu0 }
 0x79c   : > { %2091 = vrot.lane.b32.xlu1 %v2090_v33, %s2920_s26 }
 0x7a0   : > { %v2769_v46 = vpop.f32.mrf.mxu2 }
 0x7a1   : > { %v2771_v48 = vpop.f32.mrf.mxu3  ;;  %v2120_v34 = vpack.i.bf16 %v2769_v46, %v2767_v5  ;;  %v2155_v37 = vpack.i.bf16 %v2762_v32, %v2769_v46 }
 0x7a2   : > { %v2125_v2 = vpack.i.bf16 %v2758_v3, %v2771_v48  ;;  %v2150_v36 = vpack.i.bf16 %v2767_v5, %v2771_v48  ;;  %v2205_v52 = vpack.i.bf16 %v2762_v32, %v2771_v48 }
 0x7a3   : > { %2121 = vrot.lane.b32.xlu2 %v2120_v34, %s2920_s26 }
 0x7a4   : > { %2096 = vrot.lane.b32.xlu1 %v2090_v33, %s2921_s27  ;;  %2126 = vrot.lane.b32.xlu0 %v2125_v2, %s2920_s26 }
 0x7ab   : > { %2131 = vrot.lane.b32.xlu2 %v2120_v34, %s2921_s27 }
 0x7ac   : > { %2101 = vrot.lane.b32.xlu1 %v2090_v33, %s2302_s30  ;;  %2136 = vrot.lane.b32.xlu0 %v2125_v2, %s2921_s27 }
 0x7b3   : > { %2141 = vrot.lane.b32.xlu2 %v2120_v34, %s2302_s30 }
 0x7b4   : > { %2106 = vrot.lane.b32.xlu1 %v2105_v35, %s2301_s29  ;;  %2146 = vrot.lane.b32.xlu0 %v2125_v2, %s2302_s30  ;;  %s2924_s30 = smov 109  }
 0x7bb   : > { %2151 = vrot.lane.b32.xlu2 %v2150_v36, %s2301_s29 }
 0x7bc   : > { %2111 = vrot.lane.b32.xlu1 %v2105_v35, %s2922_s16  ;;  %2156 = vrot.lane.b32.xlu0 %v2155_v37, %s2301_s29 }
 0x7c3   : > { %2161 = vrot.lane.b32.xlu2 %v2150_v36, %s2922_s16 }
 0x7c4   : > { %2116 = vrot.lane.b32.xlu1 %v2105_v35, %s2923_s17  ;;  %2166 = vrot.lane.b32.xlu0 %v2155_v37, %s2922_s16 }
 0x7cb   : > { %2171 = vrot.lane.b32.xlu2 %v2150_v36, %s2923_s17 }
 0x7cc   : > { %2176 = vrot.lane.b32.xlu0 %v2155_v37, %s2923_s17  ;;  %2196 = vrot.lane.b32.xlu1 %v2120_v34, %s2924_s30 }
 0x7d3   : > { %2181 = vrot.lane.b32.xlu2 %v2150_v36, %s2925_s19 }
 0x7d4   : > { %2191 = vrot.lane.b32.xlu0 %v2155_v37, %s2925_s19  ;;  %2206 = vrot.lane.b32.xlu1 %v2205_v52, %s2924_s30 }
 0x7db   : > { %2186 = vrot.lane.b32.xlu2 %v2105_v35, %s2925_s19 }
 0x7dc   : > { %2201 = vrot.lane.b32.xlu0 %v2105_v35, %s2924_s30 }
 0x7e3   : > { %1674 = vperm.xlu2 %2012, %v1457_v55  }
 0x7fd   : > { %v2122_v38 = vpop.permute.xlu2 %2121 }
 0x7fe   : > { %v2124_v39 = vunpack.i.h.bf16 %v2122_v38  ;;  %v2123_v40 = vunpack.i.l.bf16 %v2122_v38 }
 0x800   : > { %v1634_v41 = vsel %vm615_vm10, %v2123_v40, %v2124_v39 }
 0x801   : > { %1684 = vmatpush.msrb.mxu1 %v1634_v41 }
 0x805   : > { %v2132_v42 = vpop.permute.xlu2 %2131 }
 0x806   : > { %v2134_v49 = vunpack.i.h.bf16 %v2132_v42  ;;  %v2133_v50 = vunpack.i.l.bf16 %v2132_v42 }
 0x808   : > { %v1608_v6 = vsel %vm603_vm7, %v2133_v50, %v2134_v49 }
 0x80d   : > { %v2142_v45 = vpop.permute.xlu2 %2141 }
 0x80e   : > { %v2092_v43 = vpop.permute.xlu1 %2091  ;;  %v2144_v7 = vunpack.i.h.bf16 %v2142_v45  ;;  %v2143_v62 = vunpack.i.l.bf16 %v2142_v45 }
 0x80f   : > { %v2094_v57 = vunpack.i.h.bf16 %v2092_v43  ;;  %v2093_v58 = vunpack.i.l.bf16 %v2092_v43 }
 0x810   : > { %v1582_v16 = vsel %vm591_vm6, %v2143_v62, %v2144_v7 }
 0x811   : > { %v1633_v54 = vsel %vm615_vm10, %v2093_v58, %v2094_v57 }
 0x815   : > { %v2812_v4 = vpop.permute.xlu2 %2151 }
 0x816   : > { %v2127_v51 = vpop.permute.xlu0 %2126  ;;  %v2097_v53 = vpop.permute.xlu1 %2096  ;;  %v2154_v27 = vunpack.i.h.bf16 %v2812_v4  ;;  %v2153_v28 = vunpack.i.l.bf16 %v2812_v4 }
 0x817   : > { %v2129_v59 = vunpack.i.h.bf16 %v2127_v51  ;;  %v2128_v60 = vunpack.i.l.bf16 %v2127_v51  ;;  %v2099_v9 = vunpack.i.h.bf16 %v2097_v53  ;;  %v2098_v10 = vunpack.i.l.bf16 %v2097_v53 }
 0x818   : > { %v1567_v36 = vsel %vm580_vm5, %v2153_v28, %v2154_v27 }
 0x819   : > { %v1632_v61 = vsel %vm615_vm10, %v2129_v59, %v2093_v58  ;;  %v1635_v0 = vsel %vm615_vm10, %v2124_v39, %v2128_v60  ;;  %v1645_v1 = vsel %vm615_vm10, %v2128_v60, %v2123_v40  ;;  %v1644_v56 = vsel %vm615_vm10, %v2094_v57, %v2129_v59 }
 0x81a   : > { %1685 = vmatpush.msrb.mxu1 %v1632_v61  ;;  %1724 = vmatpush.msrb.mxu2 %v1635_v0  ;;  %v1607_v17 = vsel %vm603_vm7, %v2098_v10, %v2099_v9 }
 0x81b   : > { %1764 = vmatpush.msrb.mxu3 %v1645_v1 }
 0x81c   : > { %1686 = vmatpush.msrb.mxu1 %v1608_v6  ;;  %1725 = vmatpush.msrb.mxu2 %v1633_v54 }
 0x81d   : > { %1765 = vmatpush.msrb.mxu3 %v1644_v56  ;;  %v2162_v19 = vpop.permute.xlu2 %2161 }
 0x81e   : > { %v2137_v63 = vpop.permute.xlu0 %2136  ;;  %v2102_v8 = vpop.permute.xlu1 %2101  ;;  %v2164_v33 = vunpack.i.h.bf16 %v2162_v19  ;;  %v2163_v34 = vunpack.i.l.bf16 %v2162_v19 }
 0x81f   : > { %v2139_v11 = vunpack.i.h.bf16 %v2137_v63  ;;  %v2138_v12 = vunpack.i.l.bf16 %v2137_v63  ;;  %v2104_v22 = vunpack.i.h.bf16 %v2102_v8  ;;  %v2103_v23 = vunpack.i.l.bf16 %v2102_v8 }
 0x820   : > { %v1541_v40 = vsel %vm568_vm2, %v2163_v34, %v2164_v33 }
 0x821   : > { %v1606_v13 = vsel %vm603_vm7, %v2139_v11, %v2098_v10  ;;  %v1609_v14 = vsel %vm603_vm7, %v2134_v49, %v2138_v12  ;;  %v1619_v15 = vsel %vm603_vm7, %v2138_v12, %v2133_v50  ;;  %v1618_v18 = vsel %vm603_vm7, %v2099_v9, %v2139_v11 }
 0x822   : > { %1687 = vmatpush.msrb.mxu1 %v1606_v13  ;;  %1726 = vmatpush.msrb.mxu2 %v1609_v14  ;;  %v1581_v29 = vsel %vm591_vm6, %v2103_v23, %v2104_v22 }
 0x823   : > { %1766 = vmatpush.msrb.mxu3 %v1619_v15 }
 0x824   : > { %1688 = vmatpush.msrb.mxu1 %v1582_v16  ;;  %1727 = vmatpush.msrb.mxu2 %v1607_v17  ;;  %v1456_v16 = vld [vmem:[%s2891_s9] sm:$0x3] }
 0x825   : > { %1767 = vmatpush.msrb.mxu3 %v1618_v18  ;;  %v2172_v37 = vpop.permute.xlu2 %2171 }
 0x826   : > { %v2147_v20 = vpop.permute.xlu0 %2146  ;;  %v2107_v21 = vpop.permute.xlu1 %2106 }
 0x827   : > { %v2149_v24 = vunpack.i.h.bf16 %v2147_v20  ;;  %v2148_v25 = vunpack.i.l.bf16 %v2147_v20  ;;  %v2109_v52 = vunpack.i.h.bf16 %v2107_v21  ;;  %v2108_v55 = vunpack.i.l.bf16 %v2107_v21 }
 0x829   : > { %v1580_v44 = vsel %vm591_vm6, %v2149_v24, %v2103_v23  ;;  %v1583_v47 = vsel %vm591_vm6, %v2144_v7, %v2148_v25  ;;  %v1593_v26 = vsel %vm591_vm6, %v2148_v25, %v2143_v62  ;;  %v1592_v30 = vsel %vm591_vm6, %v2104_v22, %v2149_v24 }
 0x82a   : > { %1689 = vmatpush.msrb.mxu1 %v1580_v44  ;;  %1728 = vmatpush.msrb.mxu2 %v1583_v47  ;;  %v1556_v41 = vsel %vm580_vm5, %v2108_v55, %v2109_v52  ;;  %v1679_v22 = vperm.slane %v1456_v16, 0 }
 0x82b   : > { %1768 = vmatpush.msrb.mxu3 %v1593_v26 }
 0x82c   : > { %1690 = vmatpush.msrb.mxu1 %v2767_v5  ;;  %1729 = vmatpush.msrb.mxu2 %v1581_v29 }
 0x82d   : > { %1769 = vmatpush.msrb.mxu3 %v1592_v30  ;;  %v2182_v53 = vpop.permute.xlu2 %2181 }
 0x82e   : > { %v2157_v2 = vpop.permute.xlu0 %2156  ;;  %v2112_v35 = vpop.permute.xlu1 %2111  ;;  %1691 = vmatpush.msrb.mxu1 %v2758_v3  ;;  %1730 = vmatpush.msrb.mxu2 %v2769_v46  ;;  %v2184_v1 = vunpack.i.h.bf16 %v2182_v53  ;;  %v2183_v4 = vunpack.i.l.bf16 %v2182_v53  ;;  %v1815_v53 = vlaneseq }
 0x82f   : > { %v2159_v38 = vunpack.i.h.bf16 %v2157_v2  ;;  %v2158_v39 = vunpack.i.l.bf16 %v2157_v2  ;;  %1770 = vmatpush.msrb.mxu3 %v2771_v48  ;;  %v2114_v45 = vunpack.i.h.bf16 %v2112_v35  ;;  %v2113_v49 = vunpack.i.l.bf16 %v2112_v35 }
 0x830   : > { %1692 = vmatpush.msrb.mxu1 %v1567_v36  ;;  %1731 = vmatpush.msrb.mxu2 %v2760_v31  ;;  %v2174_v31 = vunpack.i.h.bf16 %v2172_v37  ;;  %v1489_v15 = vsel %vm542_vm1, %v2183_v4, %v2184_v1  ;;  %v1680_v2 = vperm.slane %v1456_v16, 1 }
 0x831   : > { %1771 = vmatpush.msrb.mxu3 %v2762_v32  ;;  %v1566_v5 = vsel %vm580_vm5, %v2159_v38, %v2108_v55  ;;  %v1558_v3 = vsel %vm580_vm5, %v2154_v27, %v2158_v39  ;;  %v1559_v46 = vsel %vm580_vm5, %v2158_v39, %v2153_v28  ;;  %v1557_v48 = vsel %vm580_vm5, %v2109_v52, %v2159_v38 }
 0x832   : > { %1693 = vmatpush.msrb.mxu1 %v1566_v5  ;;  %1732 = vmatpush.msrb.mxu2 %v1558_v3  ;;  %v2173_v32 = vunpack.i.l.bf16 %v2172_v37  ;;  %v1530_v61 = vsel %vm568_vm2, %v2113_v49, %v2114_v45 }
 0x833   : > { %1772 = vmatpush.msrb.mxu3 %v1559_v46 }
 0x834   : > { %1694 = vmatpush.msrb.mxu1 %v1541_v40  ;;  %1733 = vmatpush.msrb.mxu2 %v1556_v41  ;;  %v1515_v60 = vsel %vm556_vm0, %v2173_v32, %v2174_v31 }
 0x835   : > { %1773 = vmatpush.msrb.mxu3 %v1557_v48  ;;  %v2187_v14 = vpop.permute.xlu2 %2186 }
 0x836   : > { %v2167_v42 = vpop.permute.xlu0 %2166  ;;  %v2117_v43 = vpop.permute.xlu1 %2116  ;;  %v2189_v19 = vunpack.i.h.bf16 %v2187_v14  ;;  %v2188_v23 = vunpack.i.l.bf16 %v2187_v14 }
 0x837   : > { %v2169_v50 = vunpack.i.h.bf16 %v2167_v42  ;;  %v2168_v51 = vunpack.i.l.bf16 %v2167_v42  ;;  %v2118_v6 = vunpack.i.l.bf16 %v2117_v43  ;;  %v2119_v9 = vunpack.i.h.bf16 %v2117_v43 }
 0x838   : > { %v1478_v29 = vsel %vm542_vm1, %v2188_v23, %v2189_v19 }
 0x839   : > { %v1540_v57 = vsel %vm568_vm2, %v2169_v50, %v2113_v49  ;;  %v1532_v58 = vsel %vm568_vm2, %v2164_v33, %v2168_v51  ;;  %v1533_v59 = vsel %vm568_vm2, %v2168_v51, %v2163_v34  ;;  %v1531_v0 = vsel %vm568_vm2, %v2114_v45, %v2169_v50 }
 0x83a   : > { %1695 = vmatpush.msrb.mxu1 %v1540_v57  ;;  %1734 = vmatpush.msrb.mxu2 %v1532_v58  ;;  %v1504_v17 = vsel %vm556_vm0, %v2118_v6, %v2119_v9 }
 0x83b   : > { %1774 = vmatpush.msrb.mxu3 %v1533_v59 }
 0x83c   : > { %1696 = vmatpush.msrb.mxu1 %v1515_v60  ;;  %1735 = vmatpush.msrb.mxu2 %v1530_v61 }
 0x83d   : > { %1775 = vmatpush.msrb.mxu3 %v1531_v0  ;;  %v1675_v5 = vpop.permute.xlu2 %1674 }
 0x83e   : > { %v2177_v54 = vpop.permute.xlu0 %2176  ;;  %v2197_v56 = vpop.permute.xlu1 %2196  ;;  %v1677_v3 = vperm.slane %v1675_v5, 0 }
 0x83f   : > { %v2179_v7 = vunpack.i.h.bf16 %v2177_v54  ;;  %v2178_v62 = vunpack.i.l.bf16 %v2177_v54  ;;  %v2199_v63 = vunpack.i.h.bf16 %v2197_v56  ;;  %v2198_v8 = vunpack.i.l.bf16 %v2197_v56 }
 0x841   : > { %v1514_v10 = vsel %vm556_vm0, %v2179_v7, %v2118_v6  ;;  %v1660_v11 = vsel %vm627_vm12, %v2198_v8, %v2199_v63  ;;  %v1506_v12 = vsel %vm556_vm0, %v2174_v31, %v2178_v62  ;;  %v1507_v13 = vsel %vm556_vm0, %v2178_v62, %v2173_v32 }
 0x842   : > { %1697 = vmatpush.msrb.mxu1 %v1514_v10  ;;  %1718 = vmatpush.msra.mxu0 %v1660_v11  ;;  %v1505_v18 = vsel %vm556_vm0, %v2119_v9, %v2179_v7  ;;  %vm1817_vm0 = vcmp.lt.s32.totalorder %v1815_v53, 384 }
 0x843   : > { %1736 = vmatpush.msrb.mxu2 %v1506_v12  ;;  %1776 = vmatpush.msrb.mxu3 %v1507_v13 }
 0x844   : > { %1698 = vmatpush.msrb.mxu1 %v1489_v15 }
 0x845   : > { %1737 = vmatpush.msrb.mxu2 %v1504_v17  ;;  %1777 = vmatpush.msrb.mxu3 %v1505_v18 }
 0x846   : > { %v2192_v20 = vpop.permute.xlu0 %2191  ;;  %v2207_v21 = vpop.permute.xlu1 %2206 }
 0x847   : > { %v2194_v24 = vunpack.i.h.bf16 %v2192_v20  ;;  %v2193_v25 = vunpack.i.l.bf16 %v2192_v20  ;;  %v2208_v44 = vunpack.i.l.bf16 %v2207_v21  ;;  %v2209_v34 = vunpack.i.h.bf16 %v2207_v21 }
 0x849   : > { %v1488_v47 = vsel %vm542_vm1, %v2194_v24, %v2188_v23  ;;  %v1480_v26 = vsel %vm542_vm1, %v2184_v1, %v2193_v25  ;;  %v1481_v27 = vsel %vm542_vm1, %v2193_v25, %v2183_v4  ;;  %v1661_v28 = vsel %vm627_vm12, %v2199_v63, %v2208_v44 }
 0x84a   : > { %1699 = vmatpush.msrb.mxu1 %v1488_v47  ;;  %1738 = vmatpush.msrb.mxu2 %v1480_v26  ;;  %v1479_v30 = vsel %vm542_vm1, %v2189_v19, %v2194_v24  ;;  %v1671_v55 = vsel %vm627_vm12, %v2208_v44, %v2198_v8 }
 0x84b   : > { %1778 = vmatpush.msrb.mxu3 %v1481_v27  ;;  %1700 = vmatmul.f32.vlgmr.msrb.gmra.mxu1 %v1679_v22 }
 0x84c   : > { %1758 = vmatpush.msra.mxu1 %v1661_v28  ;;  %1739 = vmatpush.msrb.mxu2 %v1478_v29 }
 0x84d   : > { %1779 = vmatpush.msrb.mxu3 %v1479_v30  ;;  %1740 = vmatmul.f32.vlgmr.msrb.gmra.mxu2 %v1679_v22 }
 0x84e   : > { %1780 = vmatmul.f32.vlgmr.msrb.gmra.mxu3 %v1679_v22  ;;  %v2202_v33 = vpop.permute.xlu0 %2201 }
 0x84f   : > { %v2204_v35 = vunpack.i.h.bf16 %v2202_v33  ;;  %v2203_v36 = vunpack.i.l.bf16 %v2202_v33 }
 0x851   : > { %v1658_v37 = vsel %vm627_vm12, %v2203_v36, %v2204_v35  ;;  %v1659_v52 = vsel %vm627_vm12, %v2204_v35, %v2209_v34  ;;  %v1670_v38 = vsel %vm627_vm12, %v2209_v34, %v2203_v36 }
 0x852   : > { %1719 = vmatpush.msra.mxu0 %v1658_v37  ;;  %1759 = vmatpush.msra.mxu1 %v1659_v52 }
 0x853   : > { %1917 = vmatmul.msk.f32.vlgmr.msra.gmra.mxu0 %vm1082_vm8, %v1680_v2  ;;  %1918 = vmatmul.msk.f32.vlgmr.msra.gmra.mxu1 %vm1082_vm8, %v1680_v2 }
 0x854   : > { %1798 = vmatpush.msrb.mxu0 %v1671_v55 }
 0x856   : > { %1799 = vmatpush.msrb.mxu0 %v1670_v38 }
 0x85b   : > { %1919 = vmatmul.msk.f32.vlgmr.msrb.gmra.mxu0 %vm1082_vm8, %v1680_v2 }
 0x8c8   : > { %v1701_v39 = vpop.f32.mrf.mxu1 }
 0x8c9   : > { %v1702_v42 = vadd.f32 %v1701_v39, %v1677_v3 }
 0x8d0   : > { %v1721_v46 = vpop.f32.mrf.mxu0  ;;  %v1741_v40 = vpop.f32.mrf.mxu2 }
 0x8d1   : > { %v1742_v41 = vadd.f32 %v1741_v40, %v1677_v3  ;;  %v1761_v48 = vpop.f32.mrf.mxu1  ;;  %v1781_v32 = vpop.f32.mrf.mxu3  ;;  %v1722_v45 = vadd.f32 %v1721_v46, %v1702_v42 }
 0x8d2   : > { %v1782_v43 = vadd.f32 %v1781_v32, %v1677_v3 }
 0x8d3   : > { %v1762_v31 = vadd.f32 %v1761_v48, %v1742_v41 }
 0x8d5   : > { %2210 = vtanh.f32 %v1762_v31 }
 0x8d8   : > { %v1801_v49 = vpop.f32.mrf.mxu0 }
 0x8d9   : > { %v1802_v50 = vadd.f32 %v1801_v49, %v1782_v43 }
 0x8db   : > { %2212 = vtanh.f32 %v1802_v50  ;;  %v2211_v51 = vpop.eup %2210 }
 0x8dc   : > { %2214 = vtanh.f32 %v1722_v45  ;;  %v1810_v57 = vrot.slane %v2211_v51, 7 }
 0x8e1   : > { %v2213_v58 = vpop.eup %2212 }
 0x8e2   : > { %v2215_v59 = vpop.eup %2214  ;;  %v1811_v60 = vrot.slane %v2213_v58, 6 }
 0x8e3   : > { %v1812_v61 = vsel %vm678_vm3, %v2215_v59, %v1810_v57 }
 0x8e4   : > { %v1813_v0 = vsel %vm682_vm4, %v1812_v61, %v1811_v60 }
 0x8e5   : > { %1819 = vst.msk [vmem:[%s525_s22] sm:$0x7] %vm1817_vm0, %v1813_v0 }
 0x8e6 PF: > { %s29_s20 = sadd.s32 1, %s2290_s20  }
 0x8e7   : > { %p26_p7 = scmp.ge.s32.totalorder %s29_s20, 4  }
 0x8e9   :  { %28 = sbr.rel (!%p26_p7) target bundleno = 5 (0x5), region = 119 }
 0x8ee   :  { %1839 = vsyncpa [#allocation4], 1 }
 0x8ef   :  { %1841 = vsyncpa [#allocation4 + $0x1], 1 }
 0x8f0   :  { %1842 = vsyncpa [#allocation6], 1 }

</bundles_post_ra>
